<compile_context>
chip_gen: v6e
topology: v6e:2x2x1
jax: 0.10.0
libtpu: 0.0.40
codegen_flags: <defaults>
</compile_context>

<pallas_src>
import functools
import math

import numpy as np

import jax
import jax.numpy as jnp
from jax.experimental import pallas as pl
from jax.experimental.pallas import tpu as pltpu

EPS = 1e-5        # nn.BatchNorm2d default eps
EXPANSION = 4     # Bottleneck.expansion

_VMEM_LIMIT = 32 * 1024 * 1024      # scoped VMEM: v7x default (32 of 64 MiB), safe everywhere
_SP_BUDGET = 22 * 1024 * 1024       # working budget used to size single-pass whole-M blocks
_TAIL_BUDGET = 26 * 1024 * 1024     # gate for the fused bottleneck-tail kernel
_TWO_PASS_TM = 256                  # M row-tile for the two-pass (large-M) path
_SP_MAX_ROWS_CAP = 4096             # above this M the M-parallel two-pass path is used


def _round_up(x, m):
    return (x + m - 1) // m * m


# --------------------------------------------------------------------------
# In-kernel helpers
# --------------------------------------------------------------------------
def _bn(y, g, b, inv_m):
    """Train-mode BatchNorm epilogue with centered (stable) biased variance."""
    mean = jnp.sum(y, axis=0, keepdims=True) * inv_m
    d = y - mean
    var = jnp.sum(d * d, axis=0, keepdims=True) * inv_m
    return d * (g * jax.lax.rsqrt(var + EPS)) + b


# --------------------------------------------------------------------------
# Pallas kernels
# --------------------------------------------------------------------------
def _mm_bn_act_kernel(*refs, relu, inv_m, with_res):
    """Single-pass: bf16 GEMM (f32 acc) + exact BN stats + [residual] + [ReLU], bf16 out."""
    if with_res:
        a_ref, w_ref, g_ref, b_ref, r_ref, o_ref = refs
    else:
        a_ref, w_ref, g_ref, b_ref, o_ref = refs
        r_ref = None
    y = jnp.dot(a_ref[...], w_ref[...], preferred_element_type=jnp.float32)
    o = _bn(y, g_ref[...], b_ref[...], inv_m)
    if r_ref is not None:
        o = o + r_ref[...].astype(jnp.float32)
    if relu:
        o = jnp.maximum(o, 0.0)
    o_ref[...] = o.astype(o_ref.dtype)


def _mm_stats_kernel(a_ref, w_ref, y_ref, s_ref, m2_ref, *, tm, m_total):
    """Two-pass / pass 1: tiled bf16 GEMM, bf16 y, per-tile centered column stats.

    Padded (zero) rows contribute nothing to the column sums; the centered
    second moment is row-masked so padding never biases it.
    """
    y = jnp.dot(a_ref[...], w_ref[...], preferred_element_type=jnp.float32)
    y_ref[...] = y.astype(y_ref.dtype)
    i = pl.program_id(0)
    n_valid = m_total - i * tm                       # rows of this tile that are real data
    nv = jnp.minimum(tm, n_valid).astype(jnp.float32)
    row = jax.lax.broadcasted_iota(jnp.int32, (tm, 1), 0)
    mask = row < n_valid
    s = jnp.sum(y, axis=0, keepdims=True)            # exact: padded rows are exactly zero
    mean_t = s / nv
    d = jnp.where(mask, y - mean_t, 0.0)
    m2 = jnp.sum(d * d, axis=0, keepdims=True)
    tn = y.shape[1]
    s_ref[...] = s.reshape(1, 1, tn)
    m2_ref[...] = m2.reshape(1, 1, tn)


def _scale_act_kernel(*refs, relu, with_res):
    """Two-pass / pass 2: y * scale + shift [+res] [+ReLU], tiled elementwise, bf16 out."""
    if with_res:
        y_ref, sc_ref, sh_ref, r_ref, o_ref = refs
    else:
        y_ref, sc_ref, sh_ref, o_ref = refs
        r_ref = None
    o = y_ref[...].astype(jnp.float32) * sc_ref[...] + sh_ref[...]
    if r_ref is not None:
        o = o + r_ref[...].astype(jnp.float32)
    if relu:
        o = jnp.maximum(o, 0.0)
    o_ref[...] = o.astype(o_ref.dtype)


def _bottleneck_tail_kernel(*refs, inv_m, has_down):
    """Fused bottleneck tail: conv2(3x3 as GEMM on patches)+BN+ReLU -> conv3(1x1)+BN
    [-> downsample(1x1)+BN] -> residual add -> ReLU, all in VMEM, bf16 out."""
    if has_down:
        (p_ref, w2_ref, g2_ref, b2_ref, w3_ref, g3_ref, b3_ref,
         xr_ref, wd_ref, gd_ref, bd_ref, o_ref) = refs
    else:
        (p_ref, w2_ref, g2_ref, b2_ref, w3_ref, g3_ref, b3_ref,
         r_ref, o_ref) = refs
    y2 = jnp.dot(p_ref[...], w2_ref[...], preferred_element_type=jnp.float32)
    t2 = jnp.maximum(_bn(y2, g2_ref[...], b2_ref[...], inv_m), 0.0).astype(jnp.bfloat16)
    y3 = jnp.dot(t2, w3_ref[...], preferred_element_type=jnp.float32)
    o = _bn(y3, g3_ref[...], b3_ref[...], inv_m)
    if has_down:
        yd = jnp.dot(xr_ref[...], wd_ref[...], preferred_element_type=jnp.float32)
        o = o + _bn(yd, gd_ref[...], bd_ref[...], inv_m)
    else:
        o = o + r_ref[...].astype(jnp.float32)
    o_ref[...] = jnp.maximum(o, 0.0).astype(o_ref.dtype)


def _maxpool_kernel(*refs):
    o_ref = refs[-1]
    m = refs[0][...]
    for r in refs[1:-1]:
        m = jnp.maximum(m, r[...])
    o_ref[...] = m


# --------------------------------------------------------------------------
# VMEM sizing helpers
# --------------------------------------------------------------------------
def _single_pass_max_rows(K, tn, with_res):
    """Largest M for which the whole-M single-pass GEMM+BN block fits the VMEM budget."""
    weight_bytes = 2 * K * tn * 2                   # bf16 weight tile (assume double-buffered)
    per_row = 2 * K * 2                             # bf16 A block
    per_row += 2 * tn * 2                           # bf16 output tile
    if with_res:
        per_row += 2 * tn * 2                       # bf16 residual tile
    per_row += 4 * tn * 4                           # f32 in-kernel temporaries (y, d, o, ...)
    rows = (_SP_BUDGET - weight_bytes) // per_row
    return int(max(0, min(rows, _SP_MAX_ROWS_CAP)))


def _tail_fits(M, K2, P, N4, C_res, has_down):
    """Conservative (2x-buffered) VMEM footprint check for the fused tail kernel."""
    if M > 2048:
        return False
    w_el = K2 * P + P * N4 + (C_res * N4 if has_down else 0)   # bf16 weights
    io_el = M * (K2 + C_res + N4)                              # bf16 patches / residual / out
    f32_el = M * (2 * P + (3 if has_down else 2) * N4)         # f32 intermediates in-kernel
    bytes_needed = 2 * 2 * (w_el + io_el) + 4 * f32_el
    return bytes_needed <= _TAIL_BUDGET


# --------------------------------------------------------------------------
# Conv + BN (+ residual) (+ ReLU) wrapper
# --------------------------------------------------------------------------
def conv_bn_act(a, w, gamma, beta, *, residual=None, relu=True, force_two_pass=False):
    """BN(a @ w) [+ residual] [+ ReLU].  a:(M,K) bf16, w:(K,N) bf16 -> (M,N) bf16."""
    M, K = a.shape
    N = w.shape[1]
    Np = _round_up(N, 128)                 # lane-dense output tiles
    if Np != N:
        assert residual is None            # residual convs always have N % 128 == 0
        w = jnp.pad(w, ((0, 0), (0, Np - N)))
        gamma = jnp.pad(gamma, (0, Np - N), constant_values=1.0)
        beta = jnp.pad(beta, (0, Np - N))
    g = gamma.astype(jnp.float32).reshape(1, Np)
    b = beta.astype(jnp.float32).reshape(1, Np)
    a = a.astype(jnp.bfloat16)
    w = w.astype(jnp.bfloat16)
    if residual is not None:
        residual = residual.astype(jnp.bfloat16)
    tn = 128                               # 128-wide tiles: good on v5e, >=2 grid steps for N>=256
    nt = Np // tn
    with_res = residual is not None

    if not force_two_pass and M <= _single_pass_max_rows(K, tn, with_res):
        # ------- single fused kernel: whole-M block, exact centered stats in-kernel -------
        kernel = functools.partial(_mm_bn_act_kernel, relu=relu, inv_m=1.0 / M,
                                   with_res=with_res)
        in_specs = [
            pl.BlockSpec((M, K), lambda j: (0, 0)),
            pl.BlockSpec((K, tn), lambda j: (0, j)),
            pl.BlockSpec((1, tn), lambda j: (0, j)),
            pl.BlockSpec((1, tn), lambda j: (0, j)),
        ]
        operands = [a, w, g, b]
        if with_res:
            in_specs.append(pl.BlockSpec((M, tn), lambda j: (0, j)))
            operands.append(residual)
        out = pl.pallas_call(
            kernel,
            out_shape=jax.ShapeDtypeStruct((M, Np), jnp.bfloat16),
            grid=(nt,),
            in_specs=in_specs,
            out_specs=pl.BlockSpec((M, tn), lambda j: (0, j)),
            compiler_params=pltpu.CompilerParams(
                dimension_semantics=("parallel",),
                vmem_limit_bytes=_VMEM_LIMIT),
        )(*operands)
        return out[:, :N] if Np != N else out

    # ------- two-pass path: M tiled (both grid axes parallel), stable Chan-combined stats -------
    tm = _TWO_PASS_TM
    Mp = _round_up(M, tm)
    mt = Mp // tm
    a_p = a if Mp == M else jnp.pad(a, ((0, Mp - M), (0, 0)))
    kernel1 = functools.partial(_mm_stats_kernel, tm=tm, m_total=M)
    y, psum, pm2 = pl.pallas_call(
        kernel1,
        out_shape=(jax.ShapeDtypeStruct((Mp, Np), jnp.bfloat16),
                   jax.ShapeDtypeStruct((mt, 1, Np), jnp.float32),
                   jax.ShapeDtypeStruct((mt, 1, Np), jnp.float32)),
        grid=(mt, nt),
        in_specs=[pl.BlockSpec((tm, K), lambda i, j: (i, 0)),
                  pl.BlockSpec((K, tn), lambda i, j: (0, j))],
        out_specs=(pl.BlockSpec((tm, tn), lambda i, j: (i, j)),
                   pl.BlockSpec((1, 1, tn), lambda i, j: (i, 0, j)),
                   pl.BlockSpec((1, 1, tn), lambda i, j: (i, 0, j))),
        compiler_params=pltpu.CompilerParams(
            dimension_semantics=("parallel", "parallel"),
            vmem_limit_bytes=_VMEM_LIMIT),
    )(a_p, w)
    # Combine per-tile centered statistics exactly (Chan's parallel variance formula).
    counts = np.full((mt, 1), float(tm), np.float32)
    counts[-1, 0] = float(M - (mt - 1) * tm)
    counts = jnp.asarray(counts)
    s = psum[:, 0, :]
    m2 = pm2[:, 0, :]
    mean = jnp.sum(s, axis=0) / M
    mean_i = s / counts
    var = (jnp.sum(m2, axis=0)
           + jnp.sum(counts * jnp.square(mean_i - mean[None, :]), axis=0)) / M
    var = jnp.maximum(var, 0.0)
    scale_v = g * jax.lax.rsqrt(var + EPS)
    shift_v = b - mean[None, :] * scale_v
    kernel2 = functools.partial(_scale_act_kernel, relu=relu, with_res=with_res)
    in_specs = [pl.BlockSpec((tm, tn), lambda i, j: (i, j)),
                pl.BlockSpec((1, tn), lambda i, j: (0, j)),
                pl.BlockSpec((1, tn), lambda i, j: (0, j))]
    operands = [y, scale_v, shift_v]
    if with_res:
        r_p = residual if Mp == M else jnp.pad(residual, ((0, Mp - M), (0, 0)))
        in_specs.append(pl.BlockSpec((tm, tn), lambda i, j: (i, j)))
        operands.append(r_p)
    out = pl.pallas_call(
        kernel2,
        out_shape=jax.ShapeDtypeStruct((Mp, Np), jnp.bfloat16),
        grid=(mt, nt),
        in_specs=in_specs,
        out_specs=pl.BlockSpec((tm, tn), lambda i, j: (i, j)),
        compiler_params=pltpu.CompilerParams(
            dimension_semantics=("parallel", "parallel"),
            vmem_limit_bytes=_VMEM_LIMIT),
    )(*operands)
    out = out[:M]
    return out[:, :N] if Np != N else out


# --------------------------------------------------------------------------
# Fused bottleneck tail (small-M / launch-overhead-bound regime)
# --------------------------------------------------------------------------
def _fused_tail(patches, blk, res_in, has_down, M):
    P = blk["w2"].shape[1]
    N4 = blk["w3"].shape[1]
    g2, b2 = blk["bn2"]
    g3, b3 = blk["bn3"]
    operands = [patches, blk["w2"], g2.reshape(1, P), b2.reshape(1, P),
                blk["w3"], g3.reshape(1, N4), b3.reshape(1, N4), res_in]
    if has_down:
        gd, bd = blk["bnd"]
        operands += [blk["wd"], gd.reshape(1, N4), bd.reshape(1, N4)]
    in_specs = [pl.BlockSpec(op.shape, lambda j: (0, 0)) for op in operands]
    kernel = functools.partial(_bottleneck_tail_kernel, inv_m=1.0 / M, has_down=has_down)
    return pl.pallas_call(
        kernel,
        out_shape=jax.ShapeDtypeStruct((M, N4), jnp.bfloat16),
        grid=(1,),
        in_specs=in_specs,
        out_specs=pl.BlockSpec((M, N4), lambda j: (0, 0)),
        compiler_params=pltpu.CompilerParams(
            dimension_semantics=("arbitrary",),
            vmem_limit_bytes=_VMEM_LIMIT),
    )(*operands)


# --------------------------------------------------------------------------
# MaxPool 3x3 / stride 2 / pad 1
# --------------------------------------------------------------------------
def maxpool_3x3_s2(x):
    """MaxPool2d(kernel_size=3, stride=2, padding=1) on NHWC input (bf16)."""
    N, H, W, C = x.shape
    k, s, pad = 3, 2, 1
    Ho = (H + 2 * pad - k) // s + 1
    Wo = (W + 2 * pad - k) // s + 1
    xp = jnp.pad(x, ((0, 0), (pad, pad), (pad, pad), (0, 0)),
                 constant_values=-jnp.inf)  # PyTorch pads with -inf for max pool
    M = N * Ho * Wo
    # TODO(synk): read the padded NHWC tile once inside the kernel and reduce the 3x3
    # window in-register; wrapper-side window extraction still costs ~9x source reads.
    views = []
    for i in range(k):
        for j in range(k):
            views.append(xp[:, i:i + s * (Ho - 1) + 1:s,
                             j:j + s * (Wo - 1) + 1:s, :].reshape(M, C))
    if M <= 1024:
        tr, Mp = M, M
    else:
        tr = 512
        Mp = _round_up(M, tr)
        views = [jnp.pad(v, ((0, Mp - M), (0, 0))) for v in views]
    out = pl.pallas_call(
        _maxpool_kernel,
        out_shape=jax.ShapeDtypeStruct((Mp, C), x.dtype),
        grid=(Mp // tr,),
        in_specs=[pl.BlockSpec((tr, C), lambda i: (i, 0)) for _ in range(k * k)],
        out_specs=pl.BlockSpec((tr, C), lambda i: (i, 0)),
        compiler_params=pltpu.CompilerParams(
            dimension_semantics=("parallel",),
            vmem_limit_bytes=_VMEM_LIMIT),
    )(*views)
    return out[:M].reshape(N, Ho, Wo, C)


# --------------------------------------------------------------------------
# JAX glue: im2col, parameters, forward
# --------------------------------------------------------------------------
def im2col(x, k, stride, padding, dilation):
    """NHWC -> (N*Ho*Wo, k*k*C) bf16 patches (ordering: kh, kw, cin)."""
    # TODO(synk): replace with in-kernel shifted-tap accumulation to avoid the
    # k*k-expanded HBM patch tensor (bf16 halves the extra traffic for now).
    N, H, W, C = x.shape
    xp = jnp.pad(x, ((0, 0), (padding, padding), (padding, padding), (0, 0)))
    Ho = (H + 2 * padding - dilation * (k - 1) - 1) // stride + 1
    Wo = (W + 2 * padding - dilation * (k - 1) - 1) // stride + 1
    cols = []
    for i in range(k):
        for j in range(k):
            cols.append(xp[:, i * dilation:i * dilation + stride * (Ho - 1) + 1:stride,
                            j * dilation:j * dilation + stride * (Wo - 1) + 1:stride, :])
    patches = jnp.concatenate(cols, axis=-1).astype(jnp.bfloat16)
    return patches.reshape(N * Ho * Wo, k * k * C), (N, Ho, Wo)


def _conv_weight(key, k, cin, cout):
    # PyTorch init: normal(0, sqrt(2 / (k*k*cout))), laid out as (k*k*cin, cout).
    std = math.sqrt(2.0 / (k * k * cout))
    w = jax.random.normal(key, (k * k * cin, cout), jnp.float32) * std
    return w.astype(jnp.bfloat16)  # MXU operand dtype


def _bn_params(c):
    return jnp.ones((c,), jnp.float32), jnp.zeros((c,), jnp.float32)


def init_params(key, layers, output_stride=16):
    assert output_stride == 16
    strides = [1, 2, 2, 1]
    kidx = [0]

    def nk():
        kidx[0] += 1
        return jax.random.fold_in(key, kidx[0])

    params = {
        "conv1_w": _conv_weight(nk(), 7, 3, 64),
        "bn1": _bn_params(64),
    }
    inplanes = 64
    planes_list = [64, 128, 256, 512]
    for li in range(4):
        planes, nblocks, stride = planes_list[li], layers[li], strides[li]
        blocks = []
        for bi in range(nblocks):
            blk = {
                "w1": _conv_weight(nk(), 1, inplanes, planes),
                "bn1": _bn_params(planes),
                "w2": _conv_weight(nk(), 3, planes, planes),
                "bn2": _bn_params(planes),
                "w3": _conv_weight(nk(), 1, planes, planes * EXPANSION),
                "bn3": _bn_params(planes * EXPANSION),
            }
            if bi == 0 and (stride != 1 or inplanes != planes * EXPANSION):
                blk["wd"] = _conv_weight(nk(), 1, inplanes, planes * EXPANSION)
                blk["bnd"] = _bn_params(planes * EXPANSION)
            blocks.append(blk)
            inplanes = planes * EXPANSION
        params[f"layer{li + 1}"] = blocks
    return params


def bottleneck_forward(x, blk, stride, dilation):
    """x: NHWC bf16. Bottleneck: 1x1 -> 3x3(stride, dilation) -> 1x1 (+residual, ReLU)."""
    N, H, W, C = x.shape
    planes = blk["w1"].shape[1]
    n4 = planes * EXPANSION
    x_flat = x.reshape(N * H * W, C)
    t1 = conv_bn_act(x_flat, blk["w1"], *blk["bn1"], relu=True)
    t1 = t1.reshape(N, H, W, planes)
    patches, (_, Ho, Wo) = im2col(t1, 3, stride, dilation, dilation)
    M = N * Ho * Wo
    has_down = "wd" in blk
    if has_down:
        xr = x[:, ::stride, ::stride, :].reshape(M, C)
    else:
        xr = x_flat  # identity residual: stride==1 and C == n4 by construction
    if _tail_fits(M, patches.shape[1], planes, n4, xr.shape[1], has_down):
        # fused conv2+BN+ReLU + conv3+BN [+ downsample+BN] + residual + ReLU
        out = _fused_tail(patches, blk, xr, has_down, M)
    else:
        out2 = conv_bn_act(patches, blk["w2"], *blk["bn2"], relu=True)
        if has_down:
            residual = conv_bn_act(xr, blk["wd"], *blk["bnd"], relu=False)
        else:
            residual = xr
        out = conv_bn_act(out2, blk["w3"], *blk["bn3"], residual=residual, relu=True)
    return out.reshape(N, Ho, Wo, n4)


def resnet_forward(x_nchw, params, output_stride=16):
    assert output_stride == 16
    strides = [1, 2, 2, 1]
    dilations = [1, 1, 1, 2]
    x = jnp.transpose(x_nchw, (0, 2, 3, 1)).astype(jnp.bfloat16)  # NCHW -> NHWC bf16
    # Stem: conv 7x7 s2 p3 + BN + ReLU + maxpool 3x3 s2 p1.
    patches, (N, Ho, Wo) = im2col(x, 7, 2, 3, 1)
    out = conv_bn_act(patches, params["conv1_w"], *params["bn1"], relu=True)
    out = out.reshape(N, Ho, Wo, 64)
    out = maxpool_3x3_s2(out)
    low_level = None
    for li in range(4):
        blocks = params[f"layer{li + 1}"]
        for bi, blk in enumerate(blocks):
            s = strides[li] if bi == 0 else 1
            out = bottleneck_forward(out, blk, s, dilations[li])
        if li == 0:
            low_level = out
    # Return in PyTorch NCHW convention (f32): (x, low_level_features).
    return (jnp.transpose(out, (0, 3, 1, 2)).astype(jnp.float32),
            jnp.transpose(low_level, (0, 3, 1, 2)).astype(jnp.float32))


# --------------------------------------------------------------------------
# Pure-JAX reference for the fused Conv+BN(+res)(+ReLU) building block
# --------------------------------------------------------------------------
def _ref_conv_bn(a, w, g, b, residual=None, relu=True):
    y = a.astype(jnp.float32) @ w.astype(jnp.float32)
    mean = jnp.mean(y, axis=0)
    var = jnp.mean(jnp.square(y - mean), axis=0)   # biased, train-mode BN
    o = (y - mean) * (g * jax.lax.rsqrt(var + EPS)) + b
    if residual is not None:
        o = o + residual.astype(jnp.float32)
    if relu:
        o = jnp.maximum(o, 0.0)
    return o


if __name__ == "__main__":
    key = jax.random.PRNGKey(0)
    kp, kx, ka, kw, kr = jax.random.split(key, 5)

    # --- micro correctness check: single-pass and (forced) two-pass vs jnp reference ---
    M0, K0, N0 = 300, 128, 256
    a0 = jax.random.normal(ka, (M0, K0), jnp.float32).astype(jnp.bfloat16)
    w0 = (jax.random.normal(kw, (K0, N0), jnp.float32) * 0.05).astype(jnp.bfloat16)
    r0 = jax.random.normal(kr, (M0, N0), jnp.float32).astype(jnp.bfloat16)
    g0 = jnp.ones((N0,), jnp.float32)
    b0 = jnp.zeros((N0,), jnp.float32)
    ref = _ref_conv_bn(a0, w0, g0, b0, residual=r0, relu=True)
    out_sp = conv_bn_act(a0, w0, g0, b0, residual=r0, relu=True)
    out_tp = conv_bn_act(a0, w0, g0, b0, residual=r0, relu=True, force_two_pass=True)
    err_sp = float(jnp.max(jnp.abs(out_sp.astype(jnp.float32) - ref)))
    err_tp = float(jnp.max(jnp.abs(out_tp.astype(jnp.float32) - ref)))
    assert err_sp < 0.25 and err_tp < 0.25, (err_sp, err_tp)

    # --- full network: Bottleneck blocks, layers=[1,1,1,1], output_stride=16 ---
    layers = (1, 1, 1, 1)
    params = init_params(kp, layers)
    x = jax.random.normal(kx, (2, 3, 32, 32), jnp.float32)  # NCHW like PyTorch

    fwd = jax.jit(lambda inp: resnet_forward(inp, params))
    y, low = fwd(x)
    jax.block_until_ready((y, low))

    assert y.shape == (2, 512 * EXPANSION, 2, 2), y.shape        # (2, 2048, 2, 2)
    assert low.shape == (2, 64 * EXPANSION, 8, 8), low.shape     # (2, 256, 8, 8)
    assert bool(jnp.all(jnp.isfinite(y))) and bool(jnp.all(jnp.isfinite(low)))
    print("KERNEL_OK")
</pallas_src>

<mosaic_0001>
module attributes {stable_mosaic.version = 11 : i64} {
  func.func @_mm_bn_act_kernel(%arg0: i32, %arg1: memref<300x128xbf16, #tpu.memory_space<vmem>>, %arg2: memref<128x128xbf16, #tpu.memory_space<vmem>>, %arg3: memref<1x128xf32, #tpu.memory_space<vmem>>, %arg4: memref<1x128xf32, #tpu.memory_space<vmem>>, %arg5: memref<300x128xbf16, #tpu.memory_space<vmem>>, %arg6: memref<300x128xbf16, #tpu.memory_space<vmem>>) attributes {dimension_semantics = [#tpu.dimension_semantics<parallel>], iteration_bounds = array<i64: 2>, scalar_prefetch = 0 : i64, scratch_operands = 0 : i64, tpu.core_type = #tpu.core_type<tc>, window_params = [{pipeline_mode = #tpu.pipeline_mode<synchronous>, transform_indices = @transform_0, window_bounds = array<i64: 300, 128>}, {transform_indices = @transform_1, window_bounds = array<i64: 128, 128>}, {transform_indices = @transform_2, window_bounds = array<i64: 1, 128>}, {transform_indices = @transform_3, window_bounds = array<i64: 1, 128>}, {transform_indices = @transform_4, window_bounds = array<i64: 300, 128>}, {transform_indices = @transform_5, window_bounds = array<i64: 300, 128>}]} {
    %c0 = arith.constant 0 : index
    %c0_0 = arith.constant 0 : index
    %0 = vector.load %arg1[%c0, %c0_0] : memref<300x128xbf16, #tpu.memory_space<vmem>>, vector<300x128xbf16>
    %c0_1 = arith.constant 0 : index
    %c0_2 = arith.constant 0 : index
    %1 = vector.load %arg2[%c0_1, %c0_2] : memref<128x128xbf16, #tpu.memory_space<vmem>>, vector<128x128xbf16>
    %cst = arith.constant dense<0.000000e+00> : vector<300x128xf32>
    %2 = tpu.matmul %0, %1, %cst {dimension_numbers = #tpu.dot_dimension_numbers<[1], [0], [0], [1], [0, 0, 1, 1], [], []>} : vector<300x128xbf16>, vector<128x128xbf16>, vector<300x128xf32> -> vector<300x128xf32>
    %c0_3 = arith.constant 0 : index
    %c0_4 = arith.constant 0 : index
    %3 = vector.load %arg3[%c0_3, %c0_4] : memref<1x128xf32, #tpu.memory_space<vmem>>, vector<1x128xf32>
    %c0_5 = arith.constant 0 : index
    %c0_6 = arith.constant 0 : index
    %4 = vector.load %arg4[%c0_5, %c0_6] : memref<1x128xf32, #tpu.memory_space<vmem>>, vector<1x128xf32>
    %cst_7 = arith.constant dense<0.000000e+00> : vector<128xf32>
    %5 = vector.multi_reduction <add>, %2, %cst_7 [0] : vector<300x128xf32> to vector<128xf32>
    %6 = vector.shape_cast %5 : vector<128xf32> to vector<1x128xf32>
    %cst_8 = arith.constant 0.00333333341 : f32
    %7 = vector.broadcast %cst_8 : f32 to vector<1x128xf32>
    %8 = arith.mulf %6, %7 : vector<1x128xf32>
    %9 = vector.broadcast %8 : vector<1x128xf32> to vector<300x128xf32>
    %10 = arith.subf %2, %9 : vector<300x128xf32>
    %11 = arith.mulf %10, %10 : vector<300x128xf32>
    %cst_9 = arith.constant dense<0.000000e+00> : vector<128xf32>
    %12 = vector.multi_reduction <add>, %11, %cst_9 [0] : vector<300x128xf32> to vector<128xf32>
    %13 = vector.shape_cast %12 : vector<128xf32> to vector<1x128xf32>
    %cst_10 = arith.constant 0.00333333341 : f32
    %14 = vector.broadcast %cst_10 : f32 to vector<1x128xf32>
    %15 = arith.mulf %13, %14 : vector<1x128xf32>
    %cst_11 = arith.constant 9.99999974E-6 : f32
    %16 = vector.broadcast %cst_11 : f32 to vector<1x128xf32>
    %17 = arith.addf %15, %16 : vector<1x128xf32>
    %18 = math.rsqrt %17 : vector<1x128xf32>
    %19 = arith.mulf %3, %18 : vector<1x128xf32>
    %20 = vector.broadcast %19 : vector<1x128xf32> to vector<300x128xf32>
    %21 = arith.mulf %10, %20 : vector<300x128xf32>
    %22 = vector.broadcast %4 : vector<1x128xf32> to vector<300x128xf32>
    %23 = arith.addf %21, %22 : vector<300x128xf32>
    %c0_12 = arith.constant 0 : index
    %c0_13 = arith.constant 0 : index
    %24 = vector.load %arg5[%c0_12, %c0_13] : memref<300x128xbf16, #tpu.memory_space<vmem>>, vector<300x128xbf16>
    %25 = arith.extf %24 : vector<300x128xbf16> to vector<300x128xf32>
    %26 = arith.addf %23, %25 : vector<300x128xf32>
    %cst_14 = arith.constant 0.000000e+00 : f32
    %27 = vector.broadcast %cst_14 : f32 to vector<300x128xf32>
    %28 = arith.maximumf %26, %27 : vector<300x128xf32>
    %29 = arith.truncf %28 : vector<300x128xf32> to vector<300x128xbf16>
    %c0_15 = arith.constant 0 : index
    %c0_16 = arith.constant 0 : index
    %30 = vector.load %arg6[%c0_15, %c0_16] : memref<300x128xbf16, #tpu.memory_space<vmem>>, vector<300x128xbf16>
    tpu.vector_store %arg6[%c0_15, %c0_16], %29 {strides = array<i32>} : memref<300x128xbf16, #tpu.memory_space<vmem>>, vector<300x128xbf16>,
    return
  }
  func.func @transform_0(%arg0: i32) -> (i32, i32) {
    %c0_i32 = arith.constant 0 : i32
    %c0_i32_0 = arith.constant 0 : i32
    %c0_i32_1 = arith.constant 0 : i32
    return %c0_i32, %c0_i32_0 : i32, i32
  }
  func.func @transform_1(%arg0: i32) -> (i32, i32) {
    %c0_i32 = arith.constant 0 : i32
    %c0_i32_0 = arith.constant 0 : i32
    return %c0_i32, %arg0 : i32, i32
  }
  func.func @transform_2(%arg0: i32) -> (i32, i32) {
    %c0_i32 = arith.constant 0 : i32
    %c0_i32_0 = arith.constant 0 : i32
    return %c0_i32, %arg0 : i32, i32
  }
  func.func @transform_3(%arg0: i32) -> (i32, i32) {
    %c0_i32 = arith.constant 0 : i32
    %c0_i32_0 = arith.constant 0 : i32
    return %c0_i32, %arg0 : i32, i32
  }
  func.func @transform_4(%arg0: i32) -> (i32, i32) {
    %c0_i32 = arith.constant 0 : i32
    %c0_i32_0 = arith.constant 0 : i32
    return %c0_i32, %arg0 : i32, i32
  }
  func.func @transform_5(%arg0: i32) -> (i32, i32) {
    %c0_i32 = arith.constant 0 : i32
    %c0_i32_0 = arith.constant 0 : i32
    return %c0_i32, %arg0 : i32, i32
  }
}

</mosaic_0001>

<bundles_post_ra>
// kernel: tpu_custom_call.1
= control target key start
LH: loop header
LB: loop body
LE: loop exit
PB: predicated region body
PF: predicated region fallthrough
CT: control target
= control target key end

     0   :  { %10 = vsyncpa [#allocation3], 0  ;;  %s3243_s0 = inlined_call_operand.hbm [shape: bf16[300,128], index: 0, kind: input, shape index: {}]   ;;  %s3244_s1 = inlined_call_operand.hbm [shape: bf16[128,256], index: 1, kind: input, shape index: {}]   ;;  %s3245_s2 = inlined_call_operand.vmem [shape: f32[1,256], index: 2, kind: input, shape index: {}]   ;;  %s3246_s3 = inlined_call_operand.vmem [shape: f32[1,256], index: 3, kind: input, shape index: {}]   ;;  %s3247_s4 = inlined_call_operand.hbm [shape: bf16[300,256], index: 4, kind: input, shape index: {}]   ;;  %s3248_s5 = inlined_call_operand.hbm [shape: bf16[300,256], index: 5, kind: output, shape index: {}]  }
   0x1   :  { %11 = vsyncpa [#allocation6], 0 }
   0x2   :  { %13 = vsyncpa [#allocation6 + $0x1], 0 }
   0x3   :  { %14 = vsyncpa [#allocation4], 0 }
   0x4   :  { %16 = vsyncpa [#allocation4 + $0x1], 0  ;;  %s2204_s18 = smov 0   ;;  %s2206_s19 = smov 0  }
   0x5   :  { %s2208_s20 = smov 0   ;;  %s2210_s21 = smov 0  }
   0x6 LB: > { %s2225_s22 = sadd.s32 1, %s2160_s21   ;;  %s50_s23 = sadd.s32 1, %s2156_s20  ;;  %s2160_s21 = sphi %s2210_s21, %s3338_s21   ;;  %s2156_s20 = sphi %s2208_s20, %s3337_s20   ;;  %s2152_s19 = sphi %s2206_s19, %s3336_s19   ;;  %s2148_s18 = sphi %s2204_s18, %s3335_s18  }
   0x7   : > { %s47_s24 = ssub.s32 %s2160_s21, %s2225_s22  ;;  %p57_p0 = scmp.ne.s32.totalorder %s2156_s20, %s2152_s19 }
   0x8   : > { %p48_p1 = scmp.eq.s32.totalorder %s47_s24, 0  ;;  %p58_p2 = scmp.eq.s32.totalorder %s2160_s21, 0 }
   0x9   : > { %p1937_p5 = scmp.lt.s32.totalorder %s2160_s21, 2  ;;  %s204_s26 = sand.u32 1, %s2160_s21  }
   0xa   : > { %s2234_s25 = scalar_select %p48_p1, %s2156_s20, %s50_s23  }
   0xb   : > { %p59_p3 = por %p58_p2, %p57_p0  ;;  %s206_s27 = sand.u32 1, %s2156_s20  }
   0xc   : > { %s1465_s28 = sshll.u32 %s206_s27, 6  ;;  %s1466_s29 = sshll.u32 %s2160_s21, 6 }
   0xd   : > { %s2249_s7 = scalar_lea.hbm %s3244_s1, %s1466_s29  ;;  %s208_s8 = scalar_lea.vmem [#allocation5], %s1465_s28 }
   0xe   : > { %s214_s9 = sshll.u32 %s208_s8, 4  ;;  %p2251_p6 = pnand %p1937_p5, %p59_p3  ;;  %s2255_s9 = int_to_ptr.vmem [resolvable:$true] %s214_s9 }
   0xf   : > { %s2257_s11 = smul.u32 152, %s206_s27  ;;  %s2259_s12 = scalar_lea.sflag [#allocation6], %s204_s26 }
  0x10   : > { %s2010_s13 = scalar_lea.hbm %s2249_s7, 1024  ;;  %p2012_p8 = pneg %p2251_p6 }
  0x11   : > { %p2011_p7 = scmp.ne.s32.totalorder %s2249_s7, %s2010_s13  ;;  %s2015_s16 = scalar_lea.hbm %s3244_s1, 2048 }
  0x12   : > { %p2016_p11 = scmp.lt.s32.totalorder %s2249_s7, %s3244_s1  ;;  %p2017_p12 = scmp.lt.s32.totalorder %s2015_s16, %s2010_s13 }
  0x13   : > { %p2013_p9 = pnand %p2012_p8, %p2011_p7 }
  0x14   : > { %p2018_p13 = por %p2017_p12, %p2016_p11 }
  0x15   : > { %p2014_p10 = pneg %p2013_p9 }
  0x17   : > { %p2019_p1 = pnand %p2018_p13, %p2014_p10 }
  0x19   : > { %2022 = shalt.err (!%p2019_p1)
}
  0x1a   : > { %s2023_s24 = scalar_lea.vmem %s2255_s9, 1024  ;;  %s2162_s26 = smov [#allocation5]  }
  0x1b   : > { %p2024_p2 = scmp.ne.s32.totalorder %s2255_s9, %s2023_s24  ;;  %s2028_s27 = sshll.u32 %s2162_s26, 4  ;;  %s2029_s27 = int_to_ptr.vmem [resolvable:$false] %s2028_s27 }
  0x1c   : > { %s2030_s28 = scalar_lea.vmem %s2029_s27, 2048  ;;  %p2031_p7 = scmp.lt.s32.totalorder %s2255_s9, %s2029_s27 }
  0x1d   : > { %p2026_p3 = pnand %p2024_p2, %p2012_p8  ;;  %p2032_p9 = scmp.lt.s32.totalorder %s2030_s28, %s2023_s24 }
  0x1f   : > { %p2027_p5 = pneg %p2026_p3  ;;  %p2033_p4 = por %p2032_p9, %p2031_p7 }
  0x21   : > { %p2034_p11 = pnand %p2033_p4, %p2027_p5 }
  0x23   : > { %2037 = shalt.err (!%p2034_p11)
}
  0x24   : > { %s3249_s30 = smov 128   ;;  %s3251_s6 = smov 64  }
  0x25   : > { %s2165_s8 = smov 4   ;;  %s240_s13 = scalar_lea.vmem [#allocation7], %s2257_s11 }
  0x26   : > { %1928 = dma.hbm_to_vmem [thread:$0]  (!%p2251_p6), %s2249_s7, 1024, %s2255_s9, %s2259_s12, %s3249_s30, %s3251_s6, %s2165_s8  }
  0x27   : > { %s246_s14 = sshll.u32 %s240_s13, 4  ;;  %s2291_s15 = sadd.s32 4294967295, %s2160_s21   ;;  %s2330_s14 = int_to_ptr.vmem [resolvable:$true] %s246_s14 }
  0x28   : > { %s1461_s16 = sadd.s32 4294967294, %s2160_s21   ;;  %p63_p4 = scmp.ne.s32.totalorder %s2152_s19, %s2148_s18 }
  0x29   : > { %p3250_p10 = scmp.eq.s32.totalorder %s2291_s15, 0  ;;  %p165_p12 = scmp.eq.s32.totalorder %s2291_s15, 1 }
  0x2a   : > { %p171_p13 = scmp.eq.s32.totalorder %s1461_s16, 1  ;;  %p1462_p1 = scmp.ge.s32.totalorder %s2160_s21, 1 }
  0x2b   : > { %p2301_p2 = por %p3250_p10, %p63_p4  ;;  %p2308_p3 = por %p165_p12, %p57_p0 }
  0x2c   : > { %p2312_p5 = por %p171_p13, %p63_p4  ;;  %p178_p7 = scmp.lt.s32.totalorder %s2160_s21, 3 }
  0x2d   : > { %s3270_s17 = scalar_select %p2301_p2, 1, 0 }
  0x2e   : > { %s3271_s7 = scalar_select %p2308_p3, 1, 0 }
  0x2f   : > { %s3272_s9 = scalar_select %p2312_p5, 1, 0 }
  0x30   : > { %s2322_s24 = scalar_lea.hbm %s3247_s4, %s1466_s29  ;;  %p2324_p9 = pnand %p1462_p1, %p178_p7 }
  0x31   : > { %s2166_s27 = smov [#allocation2]   ;;  %s2038_s13 = scalar_lea.hbm %s2322_s24, 2432 }
  0x32   : > { %s2328_s28 = sshll.u32 %s2166_s27, 4  ;;  %p2039_p11 = scmp.ne.s32.totalorder %s2322_s24, %s2038_s13  ;;  %s191_s28 = int_to_ptr.vmem [resolvable:$true] %s2328_s28 }
  0x33   : > { %s2043_s11 = scalar_lea.hbm %s3247_s4, 4864  ;;  %p2044_p13 = scmp.lt.s32.totalorder %s2322_s24, %s3247_s4 }
  0x34   : > { %p2041_p4 = pnand %p2039_p11, %p2012_p8  ;;  %p2045_p1 = scmp.lt.s32.totalorder %s2043_s11, %s2038_s13 }
  0x36   : > { %p2042_p12 = pneg %p2041_p4  ;;  %p2046_p7 = por %p2045_p1, %p2044_p13 }
  0x38   : > { %p2047_p10 = pnand %p2046_p7, %p2042_p12 }
  0x3a   : > { %2050 = shalt.err (!%p2047_p10)
}
  0x3b   : > { %s2051_s27 = scalar_lea.vmem %s2330_s14, 2432  ;;  %s2167_s29 = smov [#allocation7]  }
  0x3c   : > { %p2052_p0 = scmp.ne.s32.totalorder %s2330_s14, %s2051_s27  ;;  %s2056_s16 = sshll.u32 %s2167_s29, 4  ;;  %s2057_s16 = int_to_ptr.vmem [resolvable:$false] %s2056_s16 }
  0x3d   : > { %s2058_s6 = scalar_lea.vmem %s2057_s16, 4864  ;;  %p2059_p5 = scmp.lt.s32.totalorder %s2330_s14, %s2057_s16 }
  0x3e   : > { %p2054_p11 = pnand %p2052_p0, %p2012_p8  ;;  %p2060_p3 = scmp.lt.s32.totalorder %s2058_s6, %s2051_s27 }
  0x40   : > { %p2055_p4 = pneg %p2054_p11  ;;  %p2061_p2 = por %p2060_p3, %p2059_p5 }
  0x42   : > { %p2062_p13 = pnand %p2061_p2, %p2055_p4 }
  0x44   : > { %2065 = shalt.err (!%p2062_p13)
}
  0x45   : > { %s3274_s30 = smov 64   ;;  %s3275_s13 = smov 128  }
  0x46   : > { %1931 = dma.hbm_to_vmem [thread:$0]  (!%p2251_p6), %s2322_s24, 2432, %s2330_s14, %s2259_s12, %s3275_s13, %s3274_s30, %s2165_s8  }
  0x47   : > { %p3276_p8 = scmp.eq.s32.totalorder %s2291_s15, 0  ;;  %p3277_p10 = pneg %p2324_p9 }
  0x48   : > { %s2077_s6 = scalar_lea.vmem %s191_s28, 2432  ;;  %p2085_p1 = scmp.lt.s32.totalorder %s191_s28, %s191_s28 }
  0x49   : > { %p1922_p0 = pnand %p3277_p10, %p3276_p8  ;;  %p2078_p2 = scmp.ne.s32.totalorder %s191_s28, %s2077_s6 }
  0x4a   : > { %p2086_p7 = scmp.lt.s32.totalorder %s2077_s6, %s2077_s6 }
  0x4b   : > { %p2068_p3 = pneg %p1922_p0 }
  0x4c   : > { %p2087_p11 = por %p2086_p7, %p2085_p1 }
  0x4d   : > { %p2080_p5 = pnand %p2078_p2, %p2068_p3 }
  0x4f   : > { %p2081_p12 = pneg %p2080_p5 }
  0x51   : > { %p2088_p4 = pnand %p2087_p11, %p2081_p12 }
  0x53   : > { %2091 = shalt.err (!%p2088_p4)
}
  0x54   : > { %1924 = dma.hbm_to_vmem [thread:$0]  (!%p1922_p0), %s3243_s0, 2432, %s191_s28, [#allocation3], %s3274_s30, %s3274_s30, %s2165_s8  }
  0x55   : > { %258 = sbr.rel (%p2324_p9) target bundleno = 638 (0x27e), region = 40 }
  0x5a   : > { %p3278_p6 = scmp.eq.s32.totalorder %s2291_s15, 0 }
  0x5c   : > { %2135 = dma.done.wait (%p3278_p6), [#allocation3], 2432   ;;  %p3279_p13 = pmov %p3278_p6 }
  0x5d   : > { %s264_s14 = sand.u32 1, %s2291_s15   ;;  %s2380_s24 = sand.u32 1, %s2152_s19  }
  0x5e   : > { %2137 = vsyncadd (%p3279_p13), [#allocation3], 4294964864  ;;  %s1470_s11 = sshll.u32 %s2380_s24, 6  ;;  %s265_s23 = scalar_lea.sflag [#allocation6], %s264_s14 }
  0x5f   : > { %s2383_s27 = scalar_lea.vmem [#allocation5], %s1470_s11  ;;  %p3280_p8 = scmp.ne.s32.totalorder %s3270_s17, 0 }
  0x61   : > { %2139 = dma.done.wait (%p3280_p8), %s265_s23, 3456  }
  0x62   : > { %2141 = vsyncadd (%p3280_p8), %s265_s23, 4294963840  ;;  %v2168_v0 = vmov 0.0   ;;  %vm2169_vm0 = vmmov 0   ;;  %v1981_v1 = vld [vmem:[%s2383_s27 + $0x38] sm:$0xff]   ;;  %v1982_v2 = vld [vmem:[%s2383_s27 + $0x30] sm:$0xff]   ;;  %vm761_vm1 = vcmask 1043456  }
  0x63   : > { %1801 = vmatprep.subr.bf16.mxu0 %v2168_v0  ;;  %1817 = vmatprep.mubr.msk.bf16.mxu0 %vm2169_vm0, %v2168_v0  ;;  %v1983_v3 = vld [vmem:[%s2383_s27 + $0x28] sm:$0xff]   ;;  %v1984_v4 = vld [vmem:[%s2383_s27 + $0x20] sm:$0xff]   ;;  %v1985_v5 = vld [vmem:[%s2383_s27 + $0x18] sm:$0xff]   ;;  %s1910_s8 = smul.u32 152, %s2380_s24  ;;  %p315_p9 = scmp.lt.s32.totalorder %s2291_s15, 1 }
  0x64   : > { %1893 = vmatprep.subr.bf16.mxu1 %v2168_v0  ;;  %1857 = vmatprep.mubr.msk.bf16.mxu1 %vm2169_vm0, %v2168_v0  ;;  %v1986_v6 = vld [vmem:[%s2383_s27 + $0x10] sm:$0xff]   ;;  %v1987_v7 = vld [vmem:[%s2383_s27 + $0x8] sm:$0xff]   ;;  %v1988_v8 = vld [vmem:[%s2383_s27] sm:$0xff]   ;;  %s1537_s12 = sshll.u32 %s2291_s15, 6  ;;  %s1326_s27 = scalar_lea.sflag [#allocation4], %s2380_s24 }
  0x65   : > { %1802 = vmatpush3.bf16.msra.mxu0 %v1981_v1  ;;  %1901 = vmatpush3.bf16.msra.mxu1 %v1981_v1  ;;  %v1989_v9 = vld [vmem:[#allocation2] sm:$0xff]   ;;  %v1994_v10 = vld [vmem:[#allocation2 + $0x50] sm:$0xff]   ;;  %v1990_v11 = vld [vmem:[#allocation2 + $0x8] sm:$0xff]   ;;  %s2801_s17 = scalar_lea.vmem [#allocation7], %s1910_s8  ;;  %s2950_s10 = scalar_lea.vmem [#allocation8], %s1910_s8 }
  0x66   : > { %1803 = vmatprep.subr.bf16.mxu0 %v2168_v0  ;;  %1894 = vmatprep.subr.bf16.mxu1 %v2168_v0  ;;  %v1996_v12 = vld [vmem:[#allocation2 + $0x58] sm:$0xff]   ;;  %v1991_v13 = vld [vmem:[#allocation2 + $0x10] sm:$0xff]   ;;  %v1998_v14 = vld [vmem:[#allocation2 + $0x60] sm:$0xff]   ;;  %s2807_s26 = scalar_select %p315_p9, %s2291_s15, 1 }
  0x67   : > { %v1992_v15 = vld [vmem:[#allocation2 + $0x18] sm:$0xff]   ;;  %v2000_v16 = vld [vmem:[#allocation2 + $0x68] sm:$0xff]   ;;  %v1993_v17 = vld [vmem:[#allocation2 + $0x20] sm:$0xff]   ;;  %s1338_s14 = sshll.u32 %s2950_s10, 4  ;;  %s3182_s23 = scalar_lea.hbm %s3248_s5, %s1537_s12  ;;  %s3188_s14 = int_to_ptr.vmem [resolvable:$true] %s1338_s14 }
  0x68   : > { %v2002_v18 = vld [vmem:[#allocation2 + $0x70] sm:$0xff]   ;;  %v1995_v19 = vld [vmem:[#allocation2 + $0x28] sm:$0xff]   ;;  %v2004_v20 = vld [vmem:[#allocation2 + $0x78] sm:$0xff]   ;;  %s317_s16 = scalar_lea.vmem %s3245_s2, %s2807_s26  ;;  %s320_s6 = scalar_lea.vmem %s3246_s3, %s2807_s26 }
  0x69   : > { %1804 = vmatpush3.bf16.msra.mxu0 %v1982_v2  ;;  %1902 = vmatpush3.bf16.msra.mxu1 %v1982_v2  ;;  %v1997_v21 = vld [vmem:[#allocation2 + $0x30] sm:$0xff]   ;;  %v2005_v22 = vld [vmem:[#allocation2 + $0x80] sm:$0xff]   ;;  %v1999_v23 = vld [vmem:[#allocation2 + $0x38] sm:$0xff]   ;;  %s2092_s8 = scalar_lea.vmem %s3188_s14, 2432  ;;  %p3332_p0 = scmp.ne.s32.totalorder %s3271_s7, 0 }
  0x6a   : > { %1805 = vmatprep.subr.bf16.mxu0 %v2168_v0  ;;  %1895 = vmatprep.subr.bf16.mxu1 %v2168_v0  ;;  %v2006_v24 = vld [vmem:[#allocation2 + $0x88] sm:$0xff]   ;;  %v2001_v25 = vld [vmem:[#allocation2 + $0x40] sm:$0xff]   ;;  %v2007_v26 = vld [vmem:[#allocation2 + $0x90] sm:$0x3f]   ;;  %p2093_p10 = scmp.ne.s32.totalorder %s3188_s14, %s2092_s8 }
  0x6b   : > { %v2003_v27 = vld [vmem:[#allocation2 + $0x48] sm:$0xff]  }
  0x6c   : > { %p2094_p3 = pnand %p2093_p10, %p3332_p0 }
  0x6d   : > { %1806 = vmatpush3.bf16.msra.mxu0 %v1983_v3  ;;  %1903 = vmatpush3.bf16.msra.mxu1 %v1983_v3 }
  0x6e   : > { %1807 = vmatprep.subr.bf16.mxu0 %v2168_v0  ;;  %1896 = vmatprep.subr.bf16.mxu1 %v2168_v0  ;;  %p2095_p2 = pneg %p2094_p3 }
  0x71   : > { %1808 = vmatpush3.bf16.msra.mxu0 %v1984_v4  ;;  %1904 = vmatpush3.bf16.msra.mxu1 %v1984_v4 }
  0x72   : > { %1809 = vmatprep.subr.bf16.mxu0 %v2168_v0  ;;  %1897 = vmatprep.subr.bf16.mxu1 %v2168_v0 }
  0x75   : > { %1810 = vmatpush3.bf16.msra.mxu0 %v1985_v5  ;;  %1905 = vmatpush3.bf16.msra.mxu1 %v1985_v5 }
  0x76   : > { %1811 = vmatprep.subr.bf16.mxu0 %v2168_v0  ;;  %1898 = vmatprep.subr.bf16.mxu1 %v2168_v0 }
  0x79   : > { %1812 = vmatpush3.bf16.msra.mxu0 %v1986_v6  ;;  %1906 = vmatpush3.bf16.msra.mxu1 %v1986_v6 }
  0x7a   : > { %1813 = vmatprep.subr.bf16.mxu0 %v2168_v0  ;;  %1899 = vmatprep.subr.bf16.mxu1 %v2168_v0 }
  0x7d   : > { %1814 = vmatpush3.bf16.msra.mxu0 %v1987_v7  ;;  %1907 = vmatpush3.bf16.msra.mxu1 %v1987_v7 }
  0x7e   : > { %1815 = vmatprep.subr.bf16.mxu0 %v2168_v0  ;;  %1900 = vmatprep.subr.bf16.mxu1 %v2168_v0 }
  0x81   : > { %1816 = vmatpush3.bf16.msra.mxu0 %v1988_v8  ;;  %1908 = vmatpush3.bf16.msra.mxu1 %v1988_v8 }
  0x84   : > { %1818 = vmatmul.mubr.bf16.vlgmr.msra.gmra.mxu0 %v1989_v9  ;;  %1858 = vmatmul.mubr.bf16.vlgmr.msra.gmra.mxu1 %v1994_v10 }
  0x85   : > { %1821 = vmatprep.mubr.msk.bf16.mxu0 %vm2169_vm0, %v2168_v0  ;;  %1861 = vmatprep.mubr.msk.bf16.mxu1 %vm2169_vm0, %v2168_v0 }
  0x8c   : > { %1822 = vmatmul.mubr.bf16.gmra.mxu0 %v1990_v11  ;;  %1862 = vmatmul.mubr.bf16.gmra.mxu1 %v1996_v12 }
  0x8d   : > { %1825 = vmatprep.mubr.msk.bf16.mxu0 %vm2169_vm0, %v2168_v0  ;;  %1865 = vmatprep.mubr.msk.bf16.mxu1 %vm2169_vm0, %v2168_v0 }
  0x94   : > { %1826 = vmatmul.mubr.bf16.gmra.mxu0 %v1991_v13  ;;  %1866 = vmatmul.mubr.bf16.gmra.mxu1 %v1998_v14 }
  0x95   : > { %1829 = vmatprep.mubr.msk.bf16.mxu0 %vm2169_vm0, %v2168_v0  ;;  %1869 = vmatprep.mubr.msk.bf16.mxu1 %vm2169_vm0, %v2168_v0 }
  0x9c   : > { %1830 = vmatmul.mubr.bf16.gmra.mxu0 %v1992_v15  ;;  %1870 = vmatmul.mubr.bf16.gmra.mxu1 %v2000_v16 }
  0x9d   : > { %1833 = vmatprep.mubr.msk.bf16.mxu0 %vm2169_vm0, %v2168_v0  ;;  %1873 = vmatprep.mubr.msk.bf16.mxu1 %vm2169_vm0, %v2168_v0 }
  0xa4   : > { %1834 = vmatmul.mubr.bf16.gmra.mxu0 %v1993_v17  ;;  %1874 = vmatmul.mubr.bf16.gmra.mxu1 %v2002_v18 }
  0xa5   : > { %1837 = vmatprep.mubr.msk.bf16.mxu0 %vm2169_vm0, %v2168_v0  ;;  %1877 = vmatprep.mubr.msk.bf16.mxu1 %vm2169_vm0, %v2168_v0 }
  0xac   : > { %1838 = vmatmul.mubr.bf16.gmra.mxu0 %v1995_v19  ;;  %1878 = vmatmul.mubr.bf16.gmra.mxu1 %v2004_v20 }
  0xad   : > { %1841 = vmatprep.mubr.msk.bf16.mxu0 %vm2169_vm0, %v2168_v0  ;;  %1881 = vmatprep.mubr.msk.bf16.mxu1 %vm2169_vm0, %v2168_v0 }
  0xb4   : > { %1842 = vmatmul.mubr.bf16.gmra.mxu0 %v1997_v21  ;;  %1882 = vmatmul.mubr.bf16.gmra.mxu1 %v2005_v22 }
  0xb5   : > { %1845 = vmatprep.mubr.msk.bf16.mxu0 %vm2169_vm0, %v2168_v0  ;;  %1885 = vmatprep.mubr.msk.bf16.mxu1 %vm2169_vm0, %v2168_v0 }
  0xbc   : > { %1846 = vmatmul.mubr.bf16.gmra.mxu0 %v1999_v23  ;;  %1886 = vmatmul.mubr.bf16.gmra.mxu1 %v2006_v24 }
  0xbd   : > { %1849 = vmatprep.mubr.msk.bf16.mxu0 %vm2169_vm0, %v2168_v0  ;;  %1889 = vmatprep.mubr.msk.bf16.mxu1 %vm2169_vm0, %v2168_v0 }
  0xc4   : > { %1850 = vmatmul.mubr.bf16.gmra.mxu0 %v2001_v25  ;;  %1890 = vmatmul.mubr.bf16.gmra.mxu1 %v2007_v26 }
  0xc5   : > { %1853 = vmatprep.mubr.msk.bf16.mxu0 %vm2169_vm0, %v2168_v0 }
  0xcc   : > { %1854 = vmatmul.mubr.bf16.gmra.mxu0 %v2003_v27 }
 0x144   : > { %v2451_v28 = vpop.f32.mrf.mxu0  ;;  %v2453_v29 = vpop.f32.mrf.mxu1 }
 0x146   : > { %v1819_v30 = vpop.f32.mrf.mxu0  ;;  %v1859_v31 = vpop.f32.mrf.mxu1 }
 0x148   : > { %v2455_v32 = vpop.f32.mrf.mxu0  ;;  %v2457_v33 = vpop.f32.mrf.mxu1 }
 0x149   : > { %v725_v6 = vadd.f32 %v2455_v32, %v2451_v28 }
 0x14a   : > { %v1820_v34 = vpop.f32.mrf.mxu0  ;;  %v1860_v35 = vpop.f32.mrf.mxu1 }
 0x14c   : > { %v2459_v36 = vpop.f32.mrf.mxu0  ;;  %v2461_v37 = vpop.f32.mrf.mxu1 }
 0x14d   : > { %v726_v9 = vadd.f32 %v725_v6, %v2459_v36 }
 0x14e   : > { %v1823_v38 = vpop.f32.mrf.mxu0  ;;  %v1863_v39 = vpop.f32.mrf.mxu1 }
 0x150   : > { %v2463_v40 = vpop.f32.mrf.mxu0  ;;  %v2465_v41 = vpop.f32.mrf.mxu1 }
 0x151   : > { %v727_v12 = vadd.f32 %v726_v9, %v2463_v40 }
 0x152   : > { %v1824_v42 = vpop.f32.mrf.mxu0  ;;  %v1864_v43 = vpop.f32.mrf.mxu1 }
 0x154   : > { %v2467_v44 = vpop.f32.mrf.mxu0  ;;  %v2469_v45 = vpop.f32.mrf.mxu1 }
 0x155   : > { %v728_v15 = vadd.f32 %v727_v12, %v2467_v44 }
 0x156   : > { %v1827_v46 = vpop.f32.mrf.mxu0  ;;  %v1867_v47 = vpop.f32.mrf.mxu1 }
 0x158   : > { %v2471_v48 = vpop.f32.mrf.mxu0  ;;  %v2473_v49 = vpop.f32.mrf.mxu1 }
 0x159   : > { %v729_v18 = vadd.f32 %v728_v15, %v2471_v48 }
 0x15a   : > { %v1828_v50 = vpop.f32.mrf.mxu0  ;;  %v1868_v51 = vpop.f32.mrf.mxu1 }
 0x15c   : > { %v2475_v52 = vpop.f32.mrf.mxu0  ;;  %v2477_v53 = vpop.f32.mrf.mxu1 }
 0x15d   : > { %v730_v21 = vadd.f32 %v729_v18, %v2475_v52 }
 0x15e   : > { %v1831_v54 = vpop.f32.mrf.mxu0  ;;  %v1871_v55 = vpop.f32.mrf.mxu1 }
 0x160   : > { %v2479_v56 = vpop.f32.mrf.mxu0  ;;  %v2481_v57 = vpop.f32.mrf.mxu1 }
 0x161   : > { %v731_v24 = vadd.f32 %v730_v21, %v2479_v56 }
 0x162   : > { %v1832_v58 = vpop.f32.mrf.mxu0  ;;  %v1872_v59 = vpop.f32.mrf.mxu1 }
 0x164   : > { %v2483_v60 = vpop.f32.mrf.mxu0  ;;  %v2485_v61 = vpop.f32.mrf.mxu1 }
 0x165   : > { %v732_v27 = vadd.f32 %v731_v24, %v2483_v60 }
 0x166   : > { %v1835_v62 = vpop.f32.mrf.mxu0  ;;  %v1875_v63 = vpop.f32.mrf.mxu1 }
 0x168   : > { %v2487_v0 = vpop.f32.mrf.mxu0  ;;  %v2489_v1 = vpop.f32.mrf.mxu1 }
 0x169   : > { %v733_v34 = vadd.f32 %v732_v27, %v2487_v0 }
 0x16a   : > { %v1836_v2 = vpop.f32.mrf.mxu0  ;;  %v1876_v3 = vpop.f32.mrf.mxu1 }
 0x16c   : > { %v2491_v4 = vpop.f32.mrf.mxu0  ;;  %v2493_v5 = vpop.f32.mrf.mxu1 }
 0x16d   : > { %v734_v39 = vadd.f32 %v733_v34, %v2491_v4 }
 0x16e   : > { %v1839_v7 = vpop.f32.mrf.mxu0  ;;  %v1879_v8 = vpop.f32.mrf.mxu1 }
 0x170   : > { %v2498_v10 = vpop.f32.mrf.mxu0  ;;  %v2500_v11 = vpop.f32.mrf.mxu1 }
 0x171   : > { %v735_v46 = vadd.f32 %v734_v39, %v2498_v10 }
 0x172   : > { %v1840_v13 = vpop.f32.mrf.mxu0  ;;  %v1880_v14 = vpop.f32.mrf.mxu1 }
 0x174   : > { %v2504_v16 = vpop.f32.mrf.mxu0  ;;  %v2506_v17 = vpop.f32.mrf.mxu1 }
 0x175   : > { %v736_v51 = vadd.f32 %v735_v46, %v2504_v16 }
 0x176   : > { %v1843_v19 = vpop.f32.mrf.mxu0  ;;  %v1883_v20 = vpop.f32.mrf.mxu1 }
 0x178   : > { %v2510_v22 = vpop.f32.mrf.mxu0  ;;  %v2512_v23 = vpop.f32.mrf.mxu1 }
 0x179   : > { %v737_v58 = vadd.f32 %v736_v51, %v2510_v22 }
 0x17a   : > { %v1844_v25 = vpop.f32.mrf.mxu0  ;;  %v1884_v26 = vpop.f32.mrf.mxu1 }
 0x17c   : > { %v2516_v30 = vpop.f32.mrf.mxu0  ;;  %v2518_v31 = vpop.f32.mrf.mxu1 }
 0x17d   : > { %v738_v63 = vadd.f32 %v737_v58, %v2516_v30 }
 0x17e   : > { %v1847_v35 = vpop.f32.mrf.mxu0  ;;  %v1887_v38 = vpop.f32.mrf.mxu1 }
 0x180   : > { %v2522_v42 = vpop.f32.mrf.mxu0  ;;  %v2524_v43 = vpop.f32.mrf.mxu1 }
 0x181   : > { %v739_v6 = vadd.f32 %v738_v63, %v2522_v42 }
 0x182   : > { %v1848_v47 = vpop.f32.mrf.mxu0  ;;  %v1888_v50 = vpop.f32.mrf.mxu1 }
 0x184   : > { %v2528_v54 = vpop.f32.mrf.mxu0  ;;  %v2530_v55 = vpop.f32.mrf.mxu1 }
 0x185   : > { %v740_v9 = vadd.f32 %v739_v6, %v2528_v54 }
 0x186   : > { %v1851_v59 = vpop.f32.mrf.mxu0  ;;  %v1891_v62 = vpop.f32.mrf.mxu1 }
 0x188   : > { %v2534_v2 = vpop.f32.mrf.mxu0  ;;  %v2536_v3 = vpop.f32.mrf.mxu1 }
 0x189   : > { %v741_v13 = vadd.f32 %v740_v9, %v2534_v2  ;;  %v762_v6 = vsel %vm761_vm1, %v2536_v3, 0.0 }
 0x18a   : > { %v1852_v7 = vpop.f32.mrf.mxu0  ;;  %v1892_v8 = vpop.f32.mrf.mxu1 }
 0x18c   : > { %v2540_v12 = vpop.f32.mrf.mxu0 }
 0x18d   : > { %v742_v15 = vadd.f32 %v741_v13, %v2540_v12 }
 0x18e   : > { %v1855_v14 = vpop.f32.mrf.mxu0 }
 0x190   : > { %v2544_v18 = vpop.f32.mrf.mxu0 }
 0x191   : > { %v743_v19 = vadd.f32 %v742_v15, %v2544_v18 }
 0x192   : > { %v1856_v20 = vpop.f32.mrf.mxu0 }
 0x193   : > { %v744_v21 = vadd.f32 %v743_v19, %v2453_v29 }
 0x195   : > { %v745_v24 = vadd.f32 %v744_v21, %v2457_v33 }
 0x197   : > { %v746_v25 = vadd.f32 %v745_v24, %v2461_v37 }
 0x199   : > { %v747_v26 = vadd.f32 %v746_v25, %v2465_v41 }
 0x19b   : > { %v748_v27 = vadd.f32 %v747_v26, %v2469_v45 }
 0x19d   : > { %v749_v34 = vadd.f32 %v748_v27, %v2473_v49 }
 0x19f   : > { %v750_v35 = vadd.f32 %v749_v34, %v2477_v53 }
 0x1a1   : > { %v751_v38 = vadd.f32 %v750_v35, %v2481_v57 }
 0x1a3   : > { %v752_v39 = vadd.f32 %v751_v38, %v2485_v61 }
 0x1a5   : > { %v753_v46 = vadd.f32 %v752_v39, %v2489_v1 }
 0x1a7   : > { %v754_v47 = vadd.f32 %v753_v46, %v2493_v5 }
 0x1a9   : > { %v755_v50 = vadd.f32 %v754_v47, %v2500_v11 }
 0x1ab   : > { %v756_v51 = vadd.f32 %v755_v50, %v2506_v17 }
 0x1ad   : > { %v757_v58 = vadd.f32 %v756_v51, %v2512_v23 }
 0x1af   : > { %v758_v59 = vadd.f32 %v757_v58, %v2518_v31 }
 0x1b1   : > { %v759_v62 = vadd.f32 %v758_v59, %v2524_v43 }
 0x1b3   : > { %v760_v63 = vadd.f32 %v759_v62, %v2530_v55 }
 0x1b5   : > { %v763_v7 = vadd.f32 %v762_v6, %v760_v63 }
 0x1b7   : > { %v764_v8 = vrot.slane %v763_v7, 4 }
 0x1b9   : > { %v765_v9 = vadd.f32 %v764_v8, %v763_v7 }
 0x1bb   : > { %v766_v13 = vrot.slane %v765_v9, 2 }
 0x1bd   : > { %v767_v14 = vadd.f32 %v766_v13, %v765_v9 }
 0x1bf   : > { %v768_v15 = vrot.slane %v767_v14, 1 }
 0x1c1   : > { %v769_v19 = vadd.f32 %v768_v15, %v767_v14 }
 0x1c3   : > { %v2566_v20 = vmul.f32 0.0033333334, %v769_v19 }
 0x1c5   : > { %v2570_v21 = vsub.f32 %v2451_v28, %v2566_v20  ;;  %v2574_v24 = vsub.f32 %v2455_v32, %v2566_v20  ;;  %v2578_v25 = vsub.f32 %v2459_v36, %v2566_v20  ;;  %v2586_v34 = vsub.f32 %v2463_v40, %v2566_v20 }
 0x1c6   : > { %v2590_v28 = vsub.f32 %v2467_v44, %v2566_v20  ;;  %v2596_v36 = vsub.f32 %v2471_v48, %v2566_v20  ;;  %v2602_v40 = vsub.f32 %v2475_v52, %v2566_v20  ;;  %v2608_v47 = vsub.f32 %v2479_v56, %v2566_v20 }
 0x1c7   : > { %v809_v26 = vmul.f32 %v2570_v21, %v2570_v21  ;;  %v810_v27 = vmul.f32 %v2574_v24, %v2574_v24  ;;  %v811_v32 = vmul.f32 %v2578_v25, %v2578_v25  ;;  %v812_v38 = vmul.f32 %v2586_v34, %v2586_v34 }
 0x1c8   : > { %v813_v44 = vmul.f32 %v2590_v28, %v2590_v28  ;;  %v814_v48 = vmul.f32 %v2596_v36, %v2596_v36  ;;  %v2614_v51 = vsub.f32 %v2483_v60, %v2566_v20  ;;  %v815_v52 = vmul.f32 %v2602_v40, %v2602_v40 }
 0x1c9   : > { %v847_v35 = vadd.f32 %v810_v27, %v809_v26  ;;  %v2620_v59 = vsub.f32 %v2487_v0, %v2566_v20  ;;  %v816_v56 = vmul.f32 %v2608_v47, %v2608_v47  ;;  %v2626_v63 = vsub.f32 %v2491_v4, %v2566_v20 }
 0x1ca   : > { %v817_v60 = vmul.f32 %v2614_v51, %v2614_v51  ;;  %v2632_v7 = vsub.f32 %v2498_v10, %v2566_v20  ;;  %v2638_v9 = vsub.f32 %v2504_v16, %v2566_v20  ;;  %v2644_v14 = vsub.f32 %v2510_v22, %v2566_v20 }
 0x1cb   : > { %v848_v39 = vadd.f32 %v847_v35, %v811_v32  ;;  %v818_v0 = vmul.f32 %v2620_v59, %v2620_v59  ;;  %v819_v4 = vmul.f32 %v2626_v63, %v2626_v63  ;;  %v2650_v19 = vsub.f32 %v2516_v30, %v2566_v20 }
 0x1cc   : > { %v820_v10 = vmul.f32 %v2632_v7, %v2632_v7  ;;  %v821_v16 = vmul.f32 %v2638_v9, %v2638_v9  ;;  %v2656_v27 = vsub.f32 %v2522_v42, %v2566_v20  ;;  %v822_v22 = vmul.f32 %v2644_v14, %v2644_v14 }
 0x1cd   : > { %v849_v46 = vadd.f32 %v848_v39, %v812_v38  ;;  %v2662_v35 = vsub.f32 %v2528_v54, %v2566_v20  ;;  %v823_v30 = vmul.f32 %v2650_v19, %v2650_v19  ;;  %v2668_v39 = vsub.f32 %v2534_v2, %v2566_v20 }
 0x1ce   : > { %v824_v42 = vmul.f32 %v2656_v27, %v2656_v27 }
 0x1cf   : > { %v850_v50 = vadd.f32 %v849_v46, %v813_v44  ;;  %v2674_v46 = vsub.f32 %v2540_v12, %v2566_v20  ;;  %v825_v54 = vmul.f32 %v2662_v35, %v2662_v35  ;;  %v826_v2 = vmul.f32 %v2668_v39, %v2668_v39 }
 0x1d1   : > { %v851_v58 = vadd.f32 %v850_v50, %v814_v48  ;;  %v2680_v50 = vsub.f32 %v2544_v18, %v2566_v20  ;;  %v827_v12 = vmul.f32 %v2674_v46, %v2674_v46 }
 0x1d3   : > { %v852_v62 = vadd.f32 %v851_v58, %v815_v52  ;;  %v2686_v58 = vsub.f32 %v2453_v29, %v2566_v20  ;;  %v828_v18 = vmul.f32 %v2680_v50, %v2680_v50 }
 0x1d5   : > { %v853_v6 = vadd.f32 %v852_v62, %v816_v56  ;;  %v2692_v62 = vsub.f32 %v2457_v33, %v2566_v20  ;;  %v829_v29 = vmul.f32 %v2686_v58, %v2686_v58 }
 0x1d7   : > { %v854_v8 = vadd.f32 %v853_v6, %v817_v60  ;;  %v2698_v6 = vsub.f32 %v2461_v37, %v2566_v20  ;;  %v830_v33 = vmul.f32 %v2692_v62, %v2692_v62 }
 0x1d9   : > { %v855_v13 = vadd.f32 %v854_v8, %v818_v0  ;;  %v2704_v8 = vsub.f32 %v2465_v41, %v2566_v20  ;;  %v831_v37 = vmul.f32 %v2698_v6, %v2698_v6 }
 0x1db   : > { %v856_v15 = vadd.f32 %v855_v13, %v819_v4  ;;  %v2710_v13 = vsub.f32 %v2469_v45, %v2566_v20  ;;  %v832_v41 = vmul.f32 %v2704_v8, %v2704_v8 }
 0x1dd   : > { %v857_v26 = vadd.f32 %v856_v15, %v820_v10  ;;  %v2716_v15 = vsub.f32 %v2473_v49, %v2566_v20  ;;  %v833_v45 = vmul.f32 %v2710_v13, %v2710_v13 }
 0x1df   : > { %v858_v32 = vadd.f32 %v857_v26, %v821_v16  ;;  %v2722_v26 = vsub.f32 %v2477_v53, %v2566_v20  ;;  %v834_v49 = vmul.f32 %v2716_v15, %v2716_v15 }
 0x1e1   : > { %v859_v38 = vadd.f32 %v858_v32, %v822_v22  ;;  %v2728_v32 = vsub.f32 %v2481_v57, %v2566_v20  ;;  %v835_v53 = vmul.f32 %v2722_v26, %v2722_v26 }
 0x1e3   : > { %v860_v44 = vadd.f32 %v859_v38, %v823_v30  ;;  %v2734_v38 = vsub.f32 %v2485_v61, %v2566_v20  ;;  %v836_v57 = vmul.f32 %v2728_v32, %v2728_v32 }
 0x1e5   : > { %v861_v48 = vadd.f32 %v860_v44, %v824_v42  ;;  %v2740_v44 = vsub.f32 %v2489_v1, %v2566_v20  ;;  %v837_v61 = vmul.f32 %v2734_v38, %v2734_v38 }
 0x1e7   : > { %v862_v52 = vadd.f32 %v861_v48, %v825_v54  ;;  %v2746_v48 = vsub.f32 %v2493_v5, %v2566_v20  ;;  %v838_v1 = vmul.f32 %v2740_v44, %v2740_v44 }
 0x1e9   : > { %v863_v56 = vadd.f32 %v862_v52, %v826_v2  ;;  %v2752_v52 = vsub.f32 %v2500_v11, %v2566_v20  ;;  %v839_v5 = vmul.f32 %v2746_v48, %v2746_v48 }
 0x1eb   : > { %v864_v60 = vadd.f32 %v863_v56, %v827_v12  ;;  %v2758_v56 = vsub.f32 %v2506_v17, %v2566_v20  ;;  %v840_v11 = vmul.f32 %v2752_v52, %v2752_v52 }
 0x1ed   : > { %v865_v0 = vadd.f32 %v864_v60, %v828_v18  ;;  %v2764_v60 = vsub.f32 %v2512_v23, %v2566_v20  ;;  %v841_v17 = vmul.f32 %v2758_v56, %v2758_v56 }
 0x1ef   : > { %v866_v4 = vadd.f32 %v865_v0, %v829_v29  ;;  %v2770_v0 = vsub.f32 %v2518_v31, %v2566_v20  ;;  %v842_v23 = vmul.f32 %v2764_v60, %v2764_v60  ;;  %v2786_v31 = vsub.f32 %v2530_v55, %v2566_v20 }
 0x1f1   : > { %v867_v10 = vadd.f32 %v866_v4, %v830_v33  ;;  %v2776_v4 = vsub.f32 %v2524_v43, %v2566_v20 }
 0x1f3   : > { %v868_v16 = vadd.f32 %v867_v10, %v831_v37  ;;  %v2782_v10 = vsub.f32 %v2536_v3, %v2566_v20  ;;  %v844_v43 = vmul.f32 %v2776_v4, %v2776_v4  ;;  %v845_v3 = vmul.f32 %v2786_v31, %v2786_v31 }
 0x1f5   : > { %v869_v22 = vadd.f32 %v868_v16, %v832_v41  ;;  %v843_v41 = vmul.f32 %v2770_v0, %v2770_v0 }
 0x1f7   : > { %v870_v30 = vadd.f32 %v869_v22, %v833_v45  ;;  %v846_v22 = vmul.f32 %v2782_v10, %v2782_v10 }
 0x1f9   : > { %v871_v42 = vadd.f32 %v870_v30, %v834_v49  ;;  %v883_v20 = vsel %vm761_vm1, %v846_v22, 0.0 }
 0x1fb   : > { %v872_v54 = vadd.f32 %v871_v42, %v835_v53 }
 0x1fd   : > { %v873_v2 = vadd.f32 %v872_v54, %v836_v57 }
 0x1ff   : > { %v874_v12 = vadd.f32 %v873_v2, %v837_v61 }
 0x201   : > { %v875_v18 = vadd.f32 %v874_v12, %v838_v1 }
 0x203   : > { %v876_v29 = vadd.f32 %v875_v18, %v839_v5  ;;  %v2804_v5 = vld [vmem:[%s2801_s17] sm:$0xff]   ;;  %v896_v18 = vlaneseq }
 0x205   : > { %v877_v33 = vadd.f32 %v876_v29, %v840_v11  ;;  %v2810_v11 = vld [vmem:[%s2801_s17 + $0x8] sm:$0xff]   ;;  %v2813_v29 = vld [vmem:[%s2801_s17 + $0x10] sm:$0xff]  }
 0x207   : > { %v878_v37 = vadd.f32 %v877_v33, %v841_v17  ;;  %v2816_v17 = vld [vmem:[%s2801_s17 + $0x18] sm:$0xff]   ;;  %v2819_v33 = vld [vmem:[%s2801_s17 + $0x20] sm:$0xff]  }
 0x209   : > { %v879_v16 = vadd.f32 %v878_v37, %v842_v23  ;;  %v1020_v23 = vld [vmem:[%s2801_s17 + $0x94] sm:$0x3] }
 0x20b   : > { %v880_v45 = vadd.f32 %v879_v16, %v843_v41  ;;  %v2824_v41 = vld [vmem:[%s2801_s17 + $0x50] sm:$0xff]   ;;  %v2827_v16 = vld [vmem:[%s2801_s17 + $0x28] sm:$0xff]  }
 0x20c   : > { %3281 = vst [vmem:[#allocation12_spill] sm:$0xff] %v2824_v41  ;;  %v2889_v41 = vld [vmem:[%s2801_s17 + $0x88] sm:$0xff]  }
 0x20d   : > { %v881_v49 = vadd.f32 %v880_v45, %v844_v43  ;;  %v1058_v43 = vunpack.c.l.bf16 %v1020_v23 }
 0x20f   : > { %v882_v55 = vadd.f32 %v881_v49, %v845_v3  ;;  %v2833_v3 = vld [vmem:[%s2801_s17 + $0x58] sm:$0xff]   ;;  %v2836_v49 = vld [vmem:[%s2801_s17 + $0x30] sm:$0xff]  }
 0x210   : > { %3282 = vst [vmem:[#allocation13_spill] sm:$0xff] %v2833_v3  ;;  %3283 = vst [vmem:[#allocation14_spill] sm:$0xff] %v2836_v49  ;;  %v2883_v3 = vld [vmem:[%s2801_s17 + $0x80] sm:$0xff]  }
 0x211   : > { %v884_v30 = vadd.f32 %v883_v20, %v882_v55  ;;  %v897_v55 = vshrl.u32 %v896_v18, 7  ;;  %v2857_v18 = vld [vmem:[%s2801_s17 + $0x68] sm:$0xff]   ;;  %v2864_v20 = vld [vmem:[%s2801_s17 + $0x40] sm:$0xff]  }
 0x212   : > { %3286 = vst [vmem:[#allocation17_spill] sm:$0xff] %v2857_v18  ;;  %3287 = vst [vmem:[#allocation18_spill] sm:$0xff] %v2864_v20 }
 0x213   : > { %v885_v53 = vrot.slane %v884_v30, 4 }
 0x215   : > { %v886_v42 = vadd.f32 %v885_v53, %v884_v30  ;;  %v2876_v30 = vld [vmem:[%s2801_s17 + $0x78] sm:$0xff]  }
 0x217   : > { %v887_v57 = vrot.slane %v886_v42, 2 }
 0x219   : > { %v888_v54 = vadd.f32 %v887_v57, %v886_v42  ;;  %v2847_v57 = vld [vmem:[%s2801_s17 + $0x60] sm:$0xff]   ;;  %v2873_v42 = vld [vmem:[%s2801_s17 + $0x48] sm:$0xff]  }
 0x21a   : > { %3284 = vst [vmem:[#allocation15_spill] sm:$0xff] %v2847_v57 }
 0x21b   : > { %v889_v61 = vrot.slane %v888_v54, 1 }
 0x21d   : > { %v890_v2 = vadd.f32 %v889_v61, %v888_v54  ;;  %v2867_v61 = vld [vmem:[%s2801_s17 + $0x70] sm:$0xff]   ;;  %v898_v54 = vsub.s32 0, %v897_v55 }
 0x21e   : > { %v2892_v55 = vld [vmem:[%s2801_s17 + $0x90] sm:$0xf] }
 0x21f   : > { %v891_v1 = vmul.f32 0.0033333334, %v890_v2  ;;  %v723_v2 = vld [vmem:[%s317_s16] sm:$0x1] }
 0x221   : > { %v892_v12 = vadd.f32 1e-05, %v891_v1  ;;  %v2909_v1 = vld [vmem:[%s320_s6] ss:$0 sm:$0xff] }
 0x223   : > { %2008 = vrsqrt.f32 %v892_v12  ;;  %v2854_v12 = vld [vmem:[%s2801_s17 + $0x38] sm:$0xff]   ;;  %s2170_s17 = smov [#allocation8]  }
 0x224   : > { %3285 = vst [vmem:[#allocation16_spill] sm:$0xff] %v2854_v12  ;;  %s2096_s26 = sshll.u32 %s2170_s17, 4  ;;  %s2097_s26 = int_to_ptr.vmem [resolvable:$false] %s2096_s26 }
 0x225   : > { %s2098_s28 = scalar_lea.vmem %s2097_s26, 4864  ;;  %p2099_p5 = scmp.lt.s32.totalorder %s3188_s14, %s2097_s26 }
 0x226   : > { %p2100_p12 = scmp.lt.s32.totalorder %s2098_s28, %s2092_s8 }
 0x228   : > { %p2101_p1 = por %p2100_p12, %p2099_p5 }
 0x22a   : > { %p2102_p7 = pnand %p2101_p1, %p2095_p2 }
 0x230   : > { %v2009_v45 = vpop.eup %2008 }
 0x231   : > { %v894_v37 = vmul.f32 %v2009_v45, %v723_v2 }
 0x233   : > { %v899_v12 = vrot.slane %v894_v37, %v898_v54 }
 0x235   : > { %v938_v22 = vmul.f32 %v899_v12, %v2782_v10  ;;  %v901_v53 = vmul.f32 %v899_v12, %v2570_v21  ;;  %v902_v57 = vmul.f32 %v899_v12, %v2574_v24  ;;  %v903_v18 = vmul.f32 %v899_v12, %v2578_v25 }
 0x236   : > { %v904_v20 = vmul.f32 %v899_v12, %v2586_v34  ;;  %v905_v37 = vmul.f32 %v899_v12, %v2590_v28  ;;  %v906_v54 = vmul.f32 %v899_v12, %v2596_v36  ;;  %v907_v45 = vmul.f32 %v899_v12, %v2602_v40 }
 0x237   : > { %v982_v2 = vadd.f32 %v2909_v1, %v938_v22  ;;  %v908_v23 = vmul.f32 %v899_v12, %v2608_v47  ;;  %v909_v10 = vmul.f32 %v899_v12, %v2614_v51  ;;  %v910_v21 = vmul.f32 %v899_v12, %v2620_v59 }
 0x238   : > { %v911_v24 = vmul.f32 %v899_v12, %v2626_v63  ;;  %v912_v25 = vmul.f32 %v899_v12, %v2632_v7  ;;  %v913_v34 = vmul.f32 %v899_v12, %v2638_v9  ;;  %v914_v28 = vmul.f32 %v899_v12, %v2644_v14 }
 0x239   : > { %v1096_v49 = vadd.f32 %v1058_v43, %v982_v2  ;;  %v915_v36 = vmul.f32 %v899_v12, %v2650_v19  ;;  %v916_v40 = vmul.f32 %v899_v12, %v2656_v27  ;;  %v917_v22 = vmul.f32 %v899_v12, %v2662_v35 }
 0x23a   : > { %v918_v47 = vmul.f32 %v899_v12, %v2668_v39  ;;  %v919_v51 = vmul.f32 %v899_v12, %v2674_v46  ;;  %v920_v59 = vmul.f32 %v899_v12, %v2680_v50  ;;  %v921_v63 = vmul.f32 %v899_v12, %v2686_v58 }
 0x23b   : > { %v1134_v7 = vmax.f32 %v1096_v49, 0.0  ;;  %v922_v9 = vmul.f32 %v899_v12, %v2692_v62  ;;  %v923_v14 = vmul.f32 %v899_v12, %v2698_v6  ;;  %v924_v19 = vmul.f32 %v899_v12, %v2704_v8 }
 0x23c   : > { %v925_v27 = vmul.f32 %v899_v12, %v2710_v13  ;;  %v926_v35 = vmul.f32 %v899_v12, %v2716_v15  ;;  %v927_v39 = vmul.f32 %v899_v12, %v2722_v26  ;;  %v928_v46 = vmul.f32 %v899_v12, %v2728_v32 }
 0x23d   : > { %v1577_v43 = vpack.c.bf16 %v1134_v7, %v1134_v7  ;;  %v929_v50 = vmul.f32 %v899_v12, %v2734_v38  ;;  %v930_v58 = vmul.f32 %v899_v12, %v2740_v44  ;;  %v931_v49 = vmul.f32 %v899_v12, %v2746_v48 }
 0x23e   : > { %v932_v62 = vmul.f32 %v899_v12, %v2752_v52  ;;  %v933_v6 = vmul.f32 %v899_v12, %v2758_v56  ;;  %v934_v8 = vmul.f32 %v899_v12, %v2764_v60  ;;  %v935_v13 = vmul.f32 %v899_v12, %v2770_v0 }
 0x23f   : > { %1324 = vst [vmem:[%s2950_s10 + $0x94] sm:$0x3] %v1577_v43  ;;  %v936_v15 = vmul.f32 %v899_v12, %v2776_v4  ;;  %v937_v26 = vmul.f32 %v899_v12, %v2786_v31  ;;  %v945_v32 = vadd.f32 %v2909_v1, %v901_v53  ;;  %v946_v38 = vadd.f32 %v2909_v1, %v902_v57 }
 0x240   : > { %v947_v44 = vadd.f32 %v2909_v1, %v903_v18  ;;  %v948_v48 = vadd.f32 %v2909_v1, %v904_v20  ;;  %v949_v52 = vadd.f32 %v2909_v1, %v905_v37  ;;  %v950_v56 = vadd.f32 %v2909_v1, %v906_v54 }
 0x241   : > { %v951_v60 = vadd.f32 %v2909_v1, %v907_v45  ;;  %v952_v0 = vadd.f32 %v2909_v1, %v908_v23  ;;  %v953_v4 = vadd.f32 %v2909_v1, %v909_v10  ;;  %v954_v31 = vadd.f32 %v2909_v1, %v910_v21 }
 0x242   : > { %v955_v53 = vadd.f32 %v2909_v1, %v911_v24  ;;  %v956_v57 = vadd.f32 %v2909_v1, %v912_v25  ;;  %v957_v12 = vadd.f32 %v2909_v1, %v913_v34  ;;  %v958_v20 = vadd.f32 %v2909_v1, %v914_v28 }
 0x243   : > { %v959_v18 = vadd.f32 %v2909_v1, %v915_v36  ;;  %v960_v2 = vadd.f32 %v2909_v1, %v916_v40  ;;  %v961_v45 = vadd.f32 %v2909_v1, %v917_v22  ;;  %v962_v37 = vadd.f32 %v2909_v1, %v918_v47 }
 0x244   : > { %v963_v54 = vadd.f32 %v2909_v1, %v919_v51  ;;  %v964_v23 = vadd.f32 %v2909_v1, %v920_v59  ;;  %v965_v10 = vadd.f32 %v2909_v1, %v921_v63  ;;  %v966_v21 = vadd.f32 %v2909_v1, %v922_v9 }
 0x245   : > { %v967_v24 = vadd.f32 %v2909_v1, %v923_v14  ;;  %v968_v25 = vadd.f32 %v2909_v1, %v924_v19  ;;  %v969_v34 = vadd.f32 %v2909_v1, %v925_v27  ;;  %v970_v28 = vadd.f32 %v2909_v1, %v926_v35 }
 0x246   : > { %v971_v36 = vadd.f32 %v2909_v1, %v927_v39  ;;  %v972_v40 = vadd.f32 %v2909_v1, %v928_v46  ;;  %v973_v22 = vadd.f32 %v2909_v1, %v929_v50  ;;  %v974_v47 = vadd.f32 %v2909_v1, %v930_v58 }
 0x247   : > { %v975_v51 = vadd.f32 %v2909_v1, %v931_v49  ;;  %v976_v59 = vadd.f32 %v2909_v1, %v932_v62  ;;  %v977_v63 = vadd.f32 %v2909_v1, %v933_v6  ;;  %v978_v7 = vadd.f32 %v2909_v1, %v934_v8 }
 0x248   : > { %v979_v9 = vadd.f32 %v2909_v1, %v935_v13  ;;  %v980_v14 = vadd.f32 %v2909_v1, %v936_v15  ;;  %v981_v19 = vadd.f32 %v2909_v1, %v937_v26  ;;  %v3288_v27 = vunpack.c.l.bf16 %v2804_v5 }
 0x249   : > { %v3289_v39 = vunpack.c.h.bf16 %v2804_v5  ;;  %v3290_v43 = vunpack.c.l.bf16 %v2810_v11  ;;  %v3291_v58 = vunpack.c.h.bf16 %v2810_v11  ;;  %v3292_v62 = vunpack.c.l.bf16 %v2813_v29 }
 0x24a   : > { %v2994_v35 = vadd.f32 %v3288_v27, %v945_v32  ;;  %v3293_v1 = vunpack.c.h.bf16 %v2813_v29  ;;  %v3294_v5 = vunpack.c.l.bf16 %v2816_v17  ;;  %v3295_v15 = vunpack.c.h.bf16 %v2816_v17 }
 0x24b   : > { %v2998_v46 = vadd.f32 %v3289_v39, %v946_v38  ;;  %v3002_v50 = vadd.f32 %v3290_v43, %v947_v44  ;;  %v3006_v49 = vadd.f32 %v3291_v58, %v948_v48  ;;  %v3010_v6 = vadd.f32 %v3292_v62, %v949_v52  ;;  %v3303_v39 = vld [vmem:[#allocation16_spill] sm:$0xff]  ;;  %v3306_v58 = vld [vmem:[#allocation18_spill] sm:$0xff] }
 0x24c   : > { %v3014_v8 = vadd.f32 %v3293_v1, %v950_v56  ;;  %v3018_v13 = vadd.f32 %v3294_v5, %v951_v60  ;;  %v3022_v26 = vadd.f32 %v3295_v15, %v952_v0  ;;  %v3296_v11 = vunpack.c.l.bf16 %v2819_v33  ;;  %v3300_v60 = vld [vmem:[#allocation14_spill] sm:$0xff]  ;;  %v3311_v15 = vld [vmem:[#allocation12_spill] sm:$0xff] }
 0x24d   : > { %v3297_v38 = vunpack.c.h.bf16 %v2819_v33  ;;  %v3298_v29 = vunpack.c.l.bf16 %v2827_v16  ;;  %v3299_v52 = vunpack.c.h.bf16 %v2827_v16  ;;  %v3301_v17 = vunpack.c.l.bf16 %v3300_v60 }
 0x24e   : > { %v3026_v32 = vadd.f32 %v3296_v11, %v953_v4  ;;  %v3302_v27 = vunpack.c.h.bf16 %v3300_v60  ;;  %v3304_v33 = vunpack.c.l.bf16 %v3303_v39  ;;  %v3305_v43 = vunpack.c.h.bf16 %v3303_v39  ;;  %v3320_v39 = vld [vmem:[#allocation17_spill] sm:$0xff] }
 0x24f   : > { %v3030_v44 = vadd.f32 %v3297_v38, %v954_v31  ;;  %v3034_v48 = vadd.f32 %v3298_v29, %v955_v53  ;;  %v3038_v56 = vadd.f32 %v3299_v52, %v956_v57  ;;  %v3042_v0 = vadd.f32 %v3301_v17, %v957_v12  ;;  %v3314_v29 = vld [vmem:[#allocation13_spill] sm:$0xff]  ;;  %v3317_v17 = vld [vmem:[#allocation15_spill] sm:$0xff] }
 0x250   : > { %v3046_v4 = vadd.f32 %v3302_v27, %v958_v20  ;;  %v3050_v31 = vadd.f32 %v3304_v33, %v959_v18  ;;  %v3054_v53 = vadd.f32 %v3305_v43, %v960_v2  ;;  %v3307_v16 = vunpack.c.l.bf16 %v3306_v58 }
 0x251   : > { %v3308_v62 = vunpack.c.h.bf16 %v3306_v58  ;;  %v3309_v1 = vunpack.c.l.bf16 %v2873_v42  ;;  %v3310_v5 = vunpack.c.h.bf16 %v2873_v42  ;;  %v3312_v11 = vunpack.c.l.bf16 %v3311_v15 }
 0x252   : > { %v3058_v57 = vadd.f32 %v3307_v16, %v961_v45  ;;  %v3313_v38 = vunpack.c.h.bf16 %v3311_v15  ;;  %v3315_v52 = vunpack.c.l.bf16 %v3314_v29  ;;  %v3316_v60 = vunpack.c.h.bf16 %v3314_v29 }
 0x253   : > { %v3062_v12 = vadd.f32 %v3308_v62, %v962_v37  ;;  %v3066_v20 = vadd.f32 %v3309_v1, %v963_v54  ;;  %v3070_v18 = vadd.f32 %v3310_v5, %v964_v23  ;;  %v3074_v2 = vadd.f32 %v3312_v11, %v965_v10 }
 0x254   : > { %v3078_v45 = vadd.f32 %v3313_v38, %v966_v21  ;;  %v3082_v37 = vadd.f32 %v3315_v52, %v967_v24  ;;  %v3086_v54 = vadd.f32 %v3316_v60, %v968_v25  ;;  %v3318_v42 = vunpack.c.l.bf16 %v3317_v17 }
 0x255   : > { %v3319_v27 = vunpack.c.h.bf16 %v3317_v17  ;;  %v3321_v33 = vunpack.c.l.bf16 %v3320_v39  ;;  %v3322_v43 = vunpack.c.h.bf16 %v3320_v39  ;;  %v3323_v58 = vunpack.c.l.bf16 %v2867_v61 }
 0x256   : > { %v3090_v23 = vadd.f32 %v3318_v42, %v969_v34  ;;  %v3324_v16 = vunpack.c.h.bf16 %v2867_v61  ;;  %v3325_v62 = vunpack.c.l.bf16 %v2876_v30  ;;  %v3326_v1 = vunpack.c.h.bf16 %v2876_v30 }
 0x257   : > { %v3094_v10 = vadd.f32 %v3319_v27, %v970_v28  ;;  %v3098_v21 = vadd.f32 %v3321_v33, %v971_v36  ;;  %v3102_v24 = vadd.f32 %v3322_v43, %v972_v40  ;;  %v3106_v25 = vadd.f32 %v3323_v58, %v973_v22 }
 0x258   : > { %v3110_v34 = vadd.f32 %v3324_v16, %v974_v47  ;;  %v3114_v28 = vadd.f32 %v3325_v62, %v975_v51  ;;  %v3118_v36 = vadd.f32 %v3326_v1, %v976_v59  ;;  %v3327_v5 = vunpack.c.l.bf16 %v2883_v3 }
 0x259   : > { %v3328_v15 = vunpack.c.h.bf16 %v2883_v3  ;;  %v3329_v61 = vunpack.c.l.bf16 %v2889_v41  ;;  %v3330_v11 = vunpack.c.h.bf16 %v2889_v41  ;;  %v3331_v30 = vunpack.c.l.bf16 %v2892_v55 }
 0x25a   : > { %v3122_v40 = vadd.f32 %v3327_v5, %v977_v63  ;;  %v1097_v38 = vmax.f32 %v2994_v35, 0.0  ;;  %v1098_v63 = vmax.f32 %v2998_v46, 0.0  ;;  %v1099_v29 = vmax.f32 %v3002_v50, 0.0 }
 0x25b   : > { %v3126_v22 = vadd.f32 %v3328_v15, %v978_v7  ;;  %v3130_v47 = vadd.f32 %v3329_v61, %v979_v9  ;;  %v3134_v51 = vadd.f32 %v3330_v11, %v980_v14  ;;  %v1095_v59 = vadd.f32 %v3331_v30, %v981_v19 }
 0x25c   : > { %v1100_v3 = vmax.f32 %v3006_v49, 0.0  ;;  %v1101_v7 = vmax.f32 %v3010_v6, 0.0  ;;  %v1102_v9 = vmax.f32 %v3014_v8, 0.0  ;;  %v1103_v52 = vmax.f32 %v3018_v13, 0.0 }
 0x25d   : > { %v1104_v41 = vmax.f32 %v3022_v26, 0.0  ;;  %v1105_v14 = vmax.f32 %v3026_v32, 0.0  ;;  %v1106_v55 = vmax.f32 %v3030_v44, 0.0  ;;  %v1107_v19 = vmax.f32 %v3034_v48, 0.0 }
 0x25e   : > { %v1108_v35 = vmax.f32 %v3038_v56, 0.0  ;;  %v1109_v46 = vmax.f32 %v3042_v0, 0.0  ;;  %v1110_v50 = vmax.f32 %v3046_v4, 0.0  ;;  %v1111_v49 = vmax.f32 %v3050_v31, 0.0 }
 0x25f   : > { %v1112_v6 = vmax.f32 %v3054_v53, 0.0  ;;  %v1113_v8 = vmax.f32 %v3058_v57, 0.0  ;;  %v1114_v13 = vmax.f32 %v3062_v12, 0.0  ;;  %v1115_v26 = vmax.f32 %v3066_v20, 0.0 }
 0x260   : > { %v1116_v32 = vmax.f32 %v3070_v18, 0.0  ;;  %v1117_v44 = vmax.f32 %v3074_v2, 0.0  ;;  %v1118_v48 = vmax.f32 %v3078_v45, 0.0  ;;  %v1119_v56 = vmax.f32 %v3082_v37, 0.0 }
 0x261   : > { %v1120_v0 = vmax.f32 %v3086_v54, 0.0  ;;  %v1121_v4 = vmax.f32 %v3090_v23, 0.0  ;;  %v1122_v31 = vmax.f32 %v3094_v10, 0.0  ;;  %v1123_v53 = vmax.f32 %v3098_v21, 0.0 }
 0x262   : > { %v1124_v57 = vmax.f32 %v3102_v24, 0.0  ;;  %v1125_v12 = vmax.f32 %v3106_v25, 0.0  ;;  %v1126_v20 = vmax.f32 %v3110_v34, 0.0  ;;  %v1127_v18 = vmax.f32 %v3114_v28, 0.0 }
 0x263   : > { %v1128_v2 = vmax.f32 %v3118_v36, 0.0  ;;  %v1129_v45 = vmax.f32 %v3122_v40, 0.0  ;;  %v1130_v37 = vmax.f32 %v3126_v22, 0.0  ;;  %v1131_v60 = vmax.f32 %v3130_v47, 0.0 }
 0x264   : > { %v1132_v54 = vmax.f32 %v3134_v51, 0.0  ;;  %v1133_v17 = vmax.f32 %v1095_v59, 0.0  ;;  %v1653_v42 = vpack.c.bf16 %v1098_v63, %v1097_v38  ;;  %v1658_v23 = vpack.c.bf16 %v1100_v3, %v1099_v29 }
 0x265   : > { %v1663_v27 = vpack.c.bf16 %v1102_v9, %v1101_v7  ;;  %v1668_v10 = vpack.c.bf16 %v1104_v41, %v1103_v52  ;;  %v1673_v39 = vpack.c.bf16 %v1106_v55, %v1105_v14  ;;  %v1678_v33 = vpack.c.bf16 %v1108_v35, %v1107_v19 }
 0x266   : > { %v1683_v21 = vpack.c.bf16 %v1110_v50, %v1109_v46  ;;  %v1576_v43 = vpack.c.bf16 %v1133_v17, %v1133_v17  ;;  %1654 = vst [vmem:[%s2950_s10] sm:$0xff] %v1653_v42   ;;  %1757 = vst [vmem:[%s2950_s10 + $0x8] sm:$0xff] %v1658_v23   ;;  %v1688_v24 = vpack.c.bf16 %v1112_v6, %v1111_v49 }
 0x267   : > { %1758 = vst [vmem:[%s2950_s10 + $0x10] sm:$0xff] %v1663_v27   ;;  %v1693_v58 = vpack.c.bf16 %v1114_v13, %v1113_v8  ;;  %v1698_v25 = vpack.c.bf16 %v1116_v32, %v1115_v26  ;;  %1759 = vst [vmem:[%s2950_s10 + $0x18] sm:$0xff] %v1668_v10   ;;  %v1703_v16 = vpack.c.bf16 %v1118_v48, %v1117_v44 }
 0x268   : > { %1760 = vst [vmem:[%s2950_s10 + $0x20] sm:$0xff] %v1673_v39   ;;  %1761 = vst [vmem:[%s2950_s10 + $0x28] sm:$0xff] %v1678_v33   ;;  %v1708_v34 = vpack.c.bf16 %v1120_v0, %v1119_v56  ;;  %v1713_v62 = vpack.c.bf16 %v1122_v31, %v1121_v4  ;;  %v1718_v28 = vpack.c.bf16 %v1124_v57, %v1123_v53 }
 0x269   : > { %1762 = vst [vmem:[%s2950_s10 + $0x30] sm:$0xff] %v1683_v21   ;;  %1763 = vst [vmem:[%s2950_s10 + $0x38] sm:$0xff] %v1688_v24   ;;  %v1723_v1 = vpack.c.bf16 %v1126_v20, %v1125_v12  ;;  %v1728_v36 = vpack.c.bf16 %v1128_v2, %v1127_v18  ;;  %v1733_v5 = vpack.c.bf16 %v1130_v37, %v1129_v45 }
 0x26a   : > { %1764 = vst [vmem:[%s2950_s10 + $0x40] sm:$0xff] %v1693_v58   ;;  %1765 = vst [vmem:[%s2950_s10 + $0x48] sm:$0xff] %v1698_v25   ;;  %v1738_v40 = vpack.c.bf16 %v1132_v54, %v1131_v60 }
 0x26b   : > { %1323 = vst [vmem:[%s2950_s10 + $0x90] sm:$0xf] %v1576_v43  ;;  %1766 = vst [vmem:[%s2950_s10 + $0x50] sm:$0xff] %v1703_v16  }
 0x26c   : > { %1767 = vst [vmem:[%s2950_s10 + $0x58] sm:$0xff] %v1708_v34   ;;  %1768 = vst [vmem:[%s2950_s10 + $0x60] sm:$0xff] %v1713_v62  }
 0x26d   : > { %1769 = vst [vmem:[%s2950_s10 + $0x68] sm:$0xff] %v1718_v28   ;;  %1770 = vst [vmem:[%s2950_s10 + $0x70] sm:$0xff] %v1723_v1  }
 0x26e   : > { %1771 = vst [vmem:[%s2950_s10 + $0x78] sm:$0xff] %v1728_v36   ;;  %1772 = vst [vmem:[%s2950_s10 + $0x80] sm:$0xff] %v1733_v5  }
 0x26f   : > { %1773 = vst [vmem:[%s2950_s10 + $0x88] sm:$0xff] %v1738_v40  }
 0x270   : > { %2105 = shalt.err (!%p2102_p7)
}
 0x271   : > { %s2106_s29 = scalar_lea.hbm %s3182_s23, 2432  ;;  %s2110_s13 = scalar_lea.hbm %s3248_s5, 4864 }
 0x272   : > { %p2107_p11 = scmp.ne.s32.totalorder %s3182_s23, %s2106_s29  ;;  %p2111_p13 = scmp.lt.s32.totalorder %s3182_s23, %s3248_s5 }
 0x273   : > { %p2112_p8 = scmp.lt.s32.totalorder %s2110_s13, %s2106_s29 }
 0x274   : > { %p2108_p4 = pnand %p2107_p11, %p3332_p0 }
 0x275   : > { %p2113_p9 = por %p2112_p8, %p2111_p13 }
 0x276   : > { %p2109_p6 = pneg %p2108_p4 }
 0x278   : > { %p2114_p10 = pnand %p2113_p9, %p2109_p6 }
 0x27a   : > { %2117 = shalt.err (!%p2114_p10)
}
 0x27b   : > { %s2171_s12 = smov 64   ;;  %s2172_s15 = smov 128  }
 0x27c   : > { %s2173_s11 = smov 4  }
 0x27d   : > { %1919 = dma.vmem_to_hbm [thread:$0]  (%p3332_p0), %s3188_s14, 2432, %s3182_s23, %s1326_s27, %s2171_s12, %s2172_s15, %s2173_s11  }
 0x27e PF: > { %s1353_s8 = sand.u32 1, %s2148_s18   ;;  %p3333_p3 = scmp.ne.s32.totalorder %s3272_s9, 0 }
 0x27f   : > { %p3334_p2 = scmp.ge.s32.totalorder %s2160_s21, 2  ;;  %s1354_s17 = scalar_lea.sflag [#allocation4], %s1353_s8 }
 0x281   : > { %p1933_p5 = pnand %p3334_p2, %p3333_p3 }
 0x283   : > { %p1934_p12 = pneg %p1933_p5 }
 0x285   : > { %2143 = dma.done.wait (%p1934_p12), %s1354_s17, 2432  }
 0x286   : > { %2145 = vsyncadd (%p1934_p12), %s1354_s17, 4294964864  ;;  %p19_p1 = scmp.ge.s32.totalorder %s2225_s22, 4   ;;  %s3335_s18 = smov %s2152_s19 }
 0x287   : > { %s3336_s19 = smov %s2156_s20  ;;  %s3337_s20 = smov %s2234_s25 }
 0x288   : > { %s3338_s21 = smov %s2225_s22  ;;  %21 = sbr.rel (!%p19_p1) target bundleno = 6 (0x6), region = 107 }
 0x28d   :  { %1359 = vsyncpa [#allocation3], 1 }
 0x28e   :  { %1361 = vsyncpa [#allocation3 + $0x1], 1 }
 0x28f   :  { %1362 = vsyncpa [#allocation6], 1 }
 0x290   :  { %1364 = vsyncpa [#allocation6 + $0x1], 1 }
 0x291   :  { %1365 = vsyncpa [#allocation4], 1 }
 0x292   :  { %1367 = vsyncpa [#allocation4 + $0x1], 1 }

</bundles_post_ra>
